<compile_context>
chip_gen: v7x
topology: tpu7x:2x2x1
jax: 0.10.0
libtpu: 0.0.40
codegen_flags: <defaults>
</compile_context>

<pallas_src>
import functools

import numpy as np
import jax
import jax.numpy as jnp
from jax import lax
from jax.experimental import pallas as pl
from jax.experimental.pallas import tpu as pltpu


# -----------------------------------------------------------------------------
# Pallas kernel: one invocation per batch block.  All L flow layers are folded
# into an in-kernel fori_loop; weights are fully VMEM resident.
# -----------------------------------------------------------------------------
def _flow_kernel(scales_ref,   # SMEM (2L,) f32 : [l0_enc, l0_dec, l1_enc, ...]
                 x_ref,        # VMEM (Bb, Dp) f32, lane-padded x block
                 z_ref,        # VMEM (Bb, Dp) f32, lane-padded z block
                 vecs_ref,     # VMEM (L, 8, 128) f32 per-layer vector slab:
                               #   rows 0-3: actnorm [ls_x, b_x, ls_z, b_z]
                               #   rows 4-5: b1 enc/dec, rows 6-7: b2 enc/dec
                 w1_ref,       # VMEM (2L, Dp, Hp)   bf16  (idx = 2*l + k)
                 w2_ref,       # VMEM (2L, Hp, Hp)   bf16
                 w3_ref,       # VMEM (2L, Hp, 2*Dp) bf16  (fused s|t head)
                 b3_ref,       # VMEM (2L, 1, 2*Dp)  f32
                 out_ref,      # VMEM (Bb, 1) f32 : per-sample total log-prob
                 *, d_real):
    bb, dp = x_ref.shape
    n_layers = vecs_ref.shape[0]

    x0 = x_ref[...]
    z0 = z_ref[...]
    ldj0 = jnp.zeros((bb, 1), jnp.float32)

    def layer(l, carry):
        x, z, ldj = carry

        # ---------------- ActNormAug ----------------
        vec = vecs_ref[l]                        # (8, 128) f32
        ls_x, b_x = vec[0:1, :], vec[1:2, :]
        ls_z, b_z = vec[2:3, :], vec[3:4, :]
        x = x * jnp.exp(ls_x) + b_x
        z = z * jnp.exp(ls_z) + b_z
        # padded lanes hold zero log-scales -> contribute nothing
        ldj_an = jnp.sum(ls_x) + jnp.sum(ls_z)

        # ---------------- AugmentedLayerParam ----------------
        def coupling(inp, other, k):
            # k = 0: encoder (z' = exp(s)*z + t);  k = 1: decoder (x' = x*exp(s) + t)
            idx = 2 * l + k
            b1 = vec[4 + k:5 + k, :]             # (1, Hp)
            b2 = vec[6 + k:7 + k, :]             # (1, Hp)
            h = jnp.maximum(
                jnp.dot(inp.astype(jnp.bfloat16), w1_ref[idx],
                        preferred_element_type=jnp.float32) + b1, 0.0)
            h = jnp.maximum(
                jnp.dot(h.astype(jnp.bfloat16), w2_ref[idx],
                        preferred_element_type=jnp.float32) + b2, 0.0)
            st = jnp.dot(h.astype(jnp.bfloat16), w3_ref[idx],
                         preferred_element_type=jnp.float32) + b3_ref[idx]
            s, t = st[:, :dp], st[:, dp:]        # fused head, lane-axis slice
            e = jnp.exp(scales_ref[idx])         # scalar from SMEM
            inv_e = 1.0 / e                      # hoisted scalar reciprocal
            s = jnp.tanh(s * inv_e) * e
            new = jnp.exp(s) * other + t
            return new, jnp.sum(s, axis=-1, keepdims=True)

        z, lp_enc = coupling(x, z, 0)
        x, lp_dec = coupling(z, x, 1)
        ldj = ldj + ldj_an + lp_enc + lp_dec
        return x, z, ldj

    x, z, ldj = lax.fori_loop(0, n_layers, layer, (x0, z0, ldj0), unroll=True)

    # prior.log_prob(z).sum(-1) + prior.log_prob(x).sum(-1), per sample.
    # Padded lanes of x/z are exactly zero, so they do not contribute to the
    # quadratic term; the constant uses the *real* feature dim.
    c = -0.5 * jnp.log(2.0 * jnp.pi)
    per_sample = (ldj
                  - 0.5 * jnp.sum(z * z, axis=-1, keepdims=True)
                  - 0.5 * jnp.sum(x * x, axis=-1, keepdims=True)
                  + 2.0 * d_real * c)
    out_ref[...] = per_sample


# -----------------------------------------------------------------------------
# Parameter unpacking (matches param.chunk(L) -> [...,:-2].chunk(2) + [...,-2:])
# and lane-dense packing for the kernel.
# -----------------------------------------------------------------------------
def unpack_params(param, L, D, H):
    """Flat hypernetwork vector -> raw (unpadded) per-layer enc/dec MLP params."""
    P_model = D * H + H + H * H + H + H * 2 * D + 2 * D
    P_layer = 2 * P_model + 2
    assert param.shape == (L * P_layer,)
    per = param.reshape(L, P_layer)
    models = per[:, :2 * P_model].reshape(L, 2, P_model)   # [:, 0]=enc, [:, 1]=dec
    scales = per[:, 2 * P_model:]                          # (L, 2): [enc, dec]

    off = [0]
    def take(n, shape):
        v = models[..., off[0]:off[0] + n].reshape((L, 2) + shape)
        off[0] += n
        return v

    w1 = take(D * H, (D, H))
    b1 = take(H, (H,))
    w2 = take(H * H, (H, H))
    b2 = take(H, (H,))
    w3 = take(H * 2 * D, (H, 2 * D))       # fused s|t head, NOT split
    b3 = take(2 * D, (2 * D,))
    return w1, b1, w2, b2, w3, b3, scales


def pack_for_kernel(an, w1, b1, w2, b2, w3, b3, scales, dp, hp):
    """Zero-pad to lane-dense shapes, fold (L, 2) -> 2L, cast weights to bf16."""
    L, _, D, H = w1.shape
    assert dp % 128 == 0 and hp % 128 == 0 and dp >= D and hp >= H

    # One (8, 128) f32 tile per layer for all small per-layer vectors.
    vecs = jnp.zeros((L, 8, 128), jnp.float32)
    vecs = vecs.at[:, 0:4, :D].set(an)          # actnorm rows
    vecs = vecs.at[:, 4:6, :H].set(b1)          # b1 enc / dec
    vecs = vecs.at[:, 6:8, :H].set(b2)          # b2 enc / dec

    w1p = jnp.zeros((L, 2, dp, hp), jnp.float32).at[:, :, :D, :H].set(w1)
    w2p = jnp.zeros((L, 2, hp, hp), jnp.float32).at[:, :, :H, :H].set(w2)
    w3p = jnp.zeros((L, 2, hp, 2 * dp), jnp.float32)
    w3p = w3p.at[:, :, :H, :D].set(w3[..., :D])          # s head -> lanes [0:D]
    w3p = w3p.at[:, :, :H, dp:dp + D].set(w3[..., D:])   # t head -> lanes [dp:dp+D]
    b3p = jnp.zeros((L, 2, 1, 2 * dp), jnp.float32)
    b3p = b3p.at[:, :, 0, :D].set(b3[..., :D])
    b3p = b3p.at[:, :, 0, dp:dp + D].set(b3[..., D:])

    w1p = w1p.reshape(2 * L, dp, hp).astype(jnp.bfloat16)
    w2p = w2p.reshape(2 * L, hp, hp).astype(jnp.bfloat16)
    w3p = w3p.reshape(2 * L, hp, 2 * dp).astype(jnp.bfloat16)
    b3p = b3p.reshape(2 * L, 1, 2 * dp)
    sc = scales.reshape(2 * L).astype(jnp.float32)
    return vecs, w1p, w2p, w3p, b3p, sc


# -----------------------------------------------------------------------------
# Wrapper
# -----------------------------------------------------------------------------
def augmented_param_flow(x, z, an, w1, b1, w2, b2, w3, b3, scales,
                         *, batch_blocks=1, dp=128, hp=128):
    B, D = x.shape
    L = an.shape[0]
    assert B % batch_blocks == 0
    Bb = B // batch_blocks
    assert Bb == B or Bb % 8 == 0, "batch block must be a multiple of 8 sublanes"

    vecs, w1p, w2p, w3p, b3p, sc = pack_for_kernel(
        an, w1, b1, w2, b2, w3, b3, scales, dp, hp)
    xp = jnp.zeros((B, dp), jnp.float32).at[:, :D].set(x)
    zp = jnp.zeros((B, dp), jnp.float32).at[:, :D].set(z)

    kernel = functools.partial(_flow_kernel, d_real=D)
    # Total VMEM footprint is < 1 MiB here, comfortably inside even v7x's
    # 64 MiB / 32 MiB default scoped budget; no vmem_limit_bytes override needed.
    out = pl.pallas_call(
        kernel,
        out_shape=jax.ShapeDtypeStruct((B, 1), jnp.float32),
        grid=(batch_blocks,),
        in_specs=[
            pl.BlockSpec(memory_space=pltpu.MemorySpace.SMEM),     # scales
            pl.BlockSpec((Bb, dp), lambda b: (b, 0)),              # x block
            pl.BlockSpec((Bb, dp), lambda b: (b, 0)),              # z block
            pl.BlockSpec((L, 8, 128), lambda b: (0, 0, 0)),        # vec slab
            pl.BlockSpec((2 * L, dp, hp), lambda b: (0, 0, 0)),    # w1 stack
            pl.BlockSpec((2 * L, hp, hp), lambda b: (0, 0, 0)),    # w2 stack
            pl.BlockSpec((2 * L, hp, 2 * dp), lambda b: (0, 0, 0)),# w3 stack
            pl.BlockSpec((2 * L, 1, 2 * dp), lambda b: (0, 0, 0)), # b3 stack
        ],
        out_specs=pl.BlockSpec((Bb, 1), lambda b: (b, 0)),
        compiler_params=pltpu.CompilerParams(
            dimension_semantics=("parallel",)),   # 2x on v7x (2 TCs); no-op on v5e/v6e
    )(sc, xp, zp, vecs, w1p, w2p, w3p, b3p)
    return jnp.sum(out)


# -----------------------------------------------------------------------------
# Pure-JAX reference (same math, unpadded params; dot operands cast to bf16
# exactly like the kernel so the comparison tolerance can be tight).
# -----------------------------------------------------------------------------
def reference(x, z, an, w1, b1, w2, b2, w3, b3, scales):
    B, D = x.shape
    L = an.shape[0]
    ldj = jnp.zeros((B, 1), jnp.float32)

    def mlp(inp, wa, ba, wb, bb, wc, bc):
        h = jnp.maximum(jnp.dot(inp.astype(jnp.bfloat16), wa.astype(jnp.bfloat16),
                                preferred_element_type=jnp.float32) + ba, 0.0)
        h = jnp.maximum(jnp.dot(h.astype(jnp.bfloat16), wb.astype(jnp.bfloat16),
                                preferred_element_type=jnp.float32) + bb, 0.0)
        st = jnp.dot(h.astype(jnp.bfloat16), wc.astype(jnp.bfloat16),
                     preferred_element_type=jnp.float32) + bc
        return st[:, :D], st[:, D:]

    for l in range(L):
        ls_x, b_x = an[l, 0], an[l, 1]
        ls_z, b_z = an[l, 2], an[l, 3]
        x = x * jnp.exp(ls_x) + b_x
        z = z * jnp.exp(ls_z) + b_z
        ldj = ldj + jnp.sum(ls_x) + jnp.sum(ls_z)

        enc_e = jnp.exp(scales[l, 0])
        dec_e = jnp.exp(scales[l, 1])

        s, t = mlp(x, w1[l, 0], b1[l, 0], w2[l, 0], b2[l, 0], w3[l, 0], b3[l, 0])
        s = jnp.tanh(s / enc_e) * enc_e
        z = jnp.exp(s) * z + t
        ldj = ldj + jnp.sum(s, axis=-1, keepdims=True)

        s, t = mlp(z, w1[l, 1], b1[l, 1], w2[l, 1], b2[l, 1], w3[l, 1], b3[l, 1])
        s = jnp.tanh(s / dec_e) * dec_e
        x = x * jnp.exp(s) + t
        ldj = ldj + jnp.sum(s, axis=-1, keepdims=True)

    c = -0.5 * jnp.log(2.0 * jnp.pi)
    return jnp.sum(ldj) + jnp.sum(-0.5 * z * z + c) + jnp.sum(-0.5 * x * x + c)


if __name__ == "__main__":
    B, D, H, L = 16, 4, 32, 2          # batch, dim_in, dim_hid, num_layers
    P_model = D * H + H + H * H + H + H * 2 * D + 2 * D
    P_total = L * (2 * P_model + 2)    # 5924

    key = jax.random.PRNGKey(0)
    kx, kz, kp, ka = jax.random.split(key, 4)
    x = jax.random.normal(kx, (B, D), jnp.float32)
    # prior.sample(x.shape) is drawn host-side (deterministically) and passed in.
    z = jax.random.normal(kz, (B, D), jnp.float32)
    param = jax.random.normal(kp, (P_total,), jnp.float32) * 0.05
    an = jax.random.normal(ka, (L, 4, D), jnp.float32) * 0.1   # ActNormAug params

    raw = unpack_params(param, L, D, H)
    out = augmented_param_flow(x, z, an, *raw, batch_blocks=2)
    out = jax.block_until_ready(out)

    ref = reference(x, z, an, *raw)
    # Reference uses the same bf16 matmul operands as the kernel; the residual
    # tolerance covers f32 reduction-order and transcendental-lowering
    # differences between Mosaic and XLA (500x tighter than the old 5e-1 atol).
    np.testing.assert_allclose(np.asarray(out), np.asarray(ref),
                               rtol=1e-4, atol=1e-3)
    print("KERNEL_OK")
</pallas_src>

<mosaic_0001>
module attributes {stable_mosaic.version = 11 : i64} {
  func.func @_flow_kernel(%arg0: i32, %arg1: memref<4xf32, #tpu.memory_space<smem>>, %arg2: memref<8x128xf32, #tpu.memory_space<vmem>>, %arg3: memref<8x128xf32, #tpu.memory_space<vmem>>, %arg4: memref<2x8x128xf32, #tpu.memory_space<vmem>>, %arg5: memref<4x128x128xbf16, #tpu.memory_space<vmem>>, %arg6: memref<4x128x128xbf16, #tpu.memory_space<vmem>>, %arg7: memref<4x128x256xbf16, #tpu.memory_space<vmem>>, %arg8: memref<4x1x256xf32, #tpu.memory_space<vmem>>, %arg9: memref<8x1xf32, #tpu.memory_space<vmem>>) attributes {dimension_semantics = [#tpu.dimension_semantics<parallel>], iteration_bounds = array<i64: 2>, scalar_prefetch = 0 : i64, scratch_operands = 0 : i64, tpu.core_type = #tpu.core_type<tc>, window_params = [{transform_indices = @transform_0, window_bounds = array<i64: 4>}, {transform_indices = @transform_1, window_bounds = array<i64: 8, 128>}, {transform_indices = @transform_2, window_bounds = array<i64: 8, 128>}, {pipeline_mode = #tpu.pipeline_mode<synchronous>, transform_indices = @transform_3, window_bounds = array<i64: 2, 8, 128>}, {pipeline_mode = #tpu.pipeline_mode<synchronous>, transform_indices = @transform_4, window_bounds = array<i64: 4, 128, 128>}, {pipeline_mode = #tpu.pipeline_mode<synchronous>, transform_indices = @transform_5, window_bounds = array<i64: 4, 128, 128>}, {pipeline_mode = #tpu.pipeline_mode<synchronous>, transform_indices = @transform_6, window_bounds = array<i64: 4, 128, 256>}, {pipeline_mode = #tpu.pipeline_mode<synchronous>, transform_indices = @transform_7, window_bounds = array<i64: 4, 1, 256>}, {transform_indices = @transform_8, window_bounds = array<i64: 8, 1>}]} {
    %c0 = arith.constant 0 : index
    %c0_0 = arith.constant 0 : index
    %0 = vector.load %arg2[%c0, %c0_0] : memref<8x128xf32, #tpu.memory_space<vmem>>, vector<8x128xf32>
    %c0_1 = arith.constant 0 : index
    %c0_2 = arith.constant 0 : index
    %1 = vector.load %arg3[%c0_1, %c0_2] : memref<8x128xf32, #tpu.memory_space<vmem>>, vector<8x128xf32>
    %cst = arith.constant 0.000000e+00 : f32
    %2 = vector.broadcast %cst : f32 to vector<8x1xf32>
    %c0_i32 = arith.constant 0 : i32
    %3 = arith.index_cast %c0_i32 : i32 to index
    %c0_3 = arith.constant 0 : index
    %c0_4 = arith.constant 0 : index
    %4 = vector.load %arg4[%3, %c0_3, %c0_4] : memref<2x8x128xf32, #tpu.memory_space<vmem>>, vector<1x8x128xf32>
    %5 = vector.shape_cast %4 : vector<1x8x128xf32> to vector<8x128xf32>
    %6 = vector.extract_strided_slice %5 {offsets = [0, 0], sizes = [1, 128], strides = [1, 1]} : vector<8x128xf32> to vector<1x128xf32>
    %7 = vector.extract_strided_slice %5 {offsets = [1, 0], sizes = [1, 128], strides = [1, 1]} : vector<8x128xf32> to vector<1x128xf32>
    %8 = vector.extract_strided_slice %5 {offsets = [2, 0], sizes = [1, 128], strides = [1, 1]} : vector<8x128xf32> to vector<1x128xf32>
    %9 = vector.extract_strided_slice %5 {offsets = [3, 0], sizes = [1, 128], strides = [1, 1]} : vector<8x128xf32> to vector<1x128xf32>
    %10 = math.exp %6 : vector<1x128xf32>
    %11 = vector.broadcast %10 : vector<1x128xf32> to vector<8x128xf32>
    %12 = arith.mulf %0, %11 : vector<8x128xf32>
    %13 = vector.broadcast %7 : vector<1x128xf32> to vector<8x128xf32>
    %14 = arith.addf %12, %13 : vector<8x128xf32>
    %15 = math.exp %8 : vector<1x128xf32>
    %16 = vector.broadcast %15 : vector<1x128xf32> to vector<8x128xf32>
    %17 = arith.mulf %1, %16 : vector<8x128xf32>
    %18 = vector.broadcast %9 : vector<1x128xf32> to vector<8x128xf32>
    %19 = arith.addf %17, %18 : vector<8x128xf32>
    %20 = vector.shape_cast %6 : vector<1x128xf32> to vector<1x1x128xf32>
    %cst_5 = arith.constant dense<0.000000e+00> : vector<1xf32>
    %21 = vector.multi_reduction <add>, %20, %cst_5 [1, 2] : vector<1x1x128xf32> to vector<1xf32>
    %22 = vector.shape_cast %21 : vector<1xf32> to vector<1x1x1xf32>
    %23 = vector.extract %22[0, 0, 0] : f32 from vector<1x1x1xf32>
    %24 = vector.shape_cast %8 : vector<1x128xf32> to vector<1x1x128xf32>
    %cst_6 = arith.constant dense<0.000000e+00> : vector<1xf32>
    %25 = vector.multi_reduction <add>, %24, %cst_6 [1, 2] : vector<1x1x128xf32> to vector<1xf32>
    %26 = vector.shape_cast %25 : vector<1xf32> to vector<1x1x1xf32>
    %27 = vector.extract %26[0, 0, 0] : f32 from vector<1x1x1xf32>
    %28 = arith.addf %23, %27 : f32
    %c2_i32 = arith.constant 2 : i32
    %29 = arith.muli %c2_i32, %c0_i32 : i32
    %c0_i32_7 = arith.constant 0 : i32
    %30 = arith.addi %29, %c0_i32_7 : i32
    %31 = vector.extract_strided_slice %5 {offsets = [4, 0], sizes = [1, 128], strides = [1, 1]} : vector<8x128xf32> to vector<1x128xf32>
    %32 = vector.extract_strided_slice %5 {offsets = [6, 0], sizes = [1, 128], strides = [1, 1]} : vector<8x128xf32> to vector<1x128xf32>
    %33 = arith.truncf %14 : vector<8x128xf32> to vector<8x128xbf16>
    %34 = arith.index_cast %30 : i32 to index
    %c0_8 = arith.constant 0 : index
    %c0_9 = arith.constant 0 : index
    %35 = vector.load %arg5[%34, %c0_8, %c0_9] : memref<4x128x128xbf16, #tpu.memory_space<vmem>>, vector<1x128x128xbf16>
    %36 = vector.shape_cast %35 : vector<1x128x128xbf16> to vector<128x128xbf16>
    %cst_10 = arith.constant dense<0.000000e+00> : vector<8x128xf32>
    %37 = tpu.matmul %33, %36, %cst_10 {dimension_numbers = #tpu.dot_dimension_numbers<[1], [0], [0], [1], [0, 0, 1, 1], [], []>} : vector<8x128xbf16>, vector<128x128xbf16>, vector<8x128xf32> -> vector<8x128xf32>
    %38 = vector.broadcast %31 : vector<1x128xf32> to vector<8x128xf32>
    %39 = arith.addf %37, %38 : vector<8x128xf32>
    %cst_11 = arith.constant 0.000000e+00 : f32
    %40 = vector.broadcast %cst_11 : f32 to vector<8x128xf32>
    %41 = arith.maximumf %39, %40 : vector<8x128xf32>
    %42 = arith.truncf %41 : vector<8x128xf32> to vector<8x128xbf16>
    %43 = arith.index_cast %30 : i32 to index
    %c0_12 = arith.constant 0 : index
    %c0_13 = arith.constant 0 : index
    %44 = vector.load %arg6[%43, %c0_12, %c0_13] : memref<4x128x128xbf16, #tpu.memory_space<vmem>>, vector<1x128x128xbf16>
    %45 = vector.shape_cast %44 : vector<1x128x128xbf16> to vector<128x128xbf16>
    %cst_14 = arith.constant dense<0.000000e+00> : vector<8x128xf32>
    %46 = tpu.matmul %42, %45, %cst_14 {dimension_numbers = #tpu.dot_dimension_numbers<[1], [0], [0], [1], [0, 0, 1, 1], [], []>} : vector<8x128xbf16>, vector<128x128xbf16>, vector<8x128xf32> -> vector<8x128xf32>
    %47 = vector.broadcast %32 : vector<1x128xf32> to vector<8x128xf32>
    %48 = arith.addf %46, %47 : vector<8x128xf32>
    %cst_15 = arith.constant 0.000000e+00 : f32
    %49 = vector.broadcast %cst_15 : f32 to vector<8x128xf32>
    %50 = arith.maximumf %48, %49 : vector<8x128xf32>
    %51 = arith.truncf %50 : vector<8x128xf32> to vector<8x128xbf16>
    %52 = arith.index_cast %30 : i32 to index
    %c0_16 = arith.constant 0 : index
    %c0_17 = arith.constant 0 : index
    %53 = vector.load %arg7[%52, %c0_16, %c0_17] : memref<4x128x256xbf16, #tpu.memory_space<vmem>>, vector<1x128x256xbf16>
    %54 = vector.shape_cast %53 : vector<1x128x256xbf16> to vector<128x256xbf16>
    %cst_18 = arith.constant dense<0.000000e+00> : vector<8x256xf32>
    %55 = tpu.matmul %51, %54, %cst_18 {dimension_numbers = #tpu.dot_dimension_numbers<[1], [0], [0], [1], [0, 0, 1, 1], [], []>} : vector<8x128xbf16>, vector<128x256xbf16>, vector<8x256xf32> -> vector<8x256xf32>
    %56 = arith.index_cast %30 : i32 to index
    %c0_19 = arith.constant 0 : index
    %c0_20 = arith.constant 0 : index
    %57 = vector.load %arg8[%56, %c0_19, %c0_20] : memref<4x1x256xf32, #tpu.memory_space<vmem>>, vector<1x1x256xf32>
    %58 = vector.shape_cast %57 : vector<1x1x256xf32> to vector<1x256xf32>
    %59 = vector.broadcast %58 : vector<1x256xf32> to vector<8x256xf32>
    %60 = arith.addf %55, %59 : vector<8x256xf32>
    %61 = vector.extract_strided_slice %60 {offsets = [0, 0], sizes = [8, 128], strides = [1, 1]} : vector<8x256xf32> to vector<8x128xf32>
    %62 = vector.extract_strided_slice %60 {offsets = [0, 128], sizes = [8, 128], strides = [1, 1]} : vector<8x256xf32> to vector<8x128xf32>
    %63 = arith.index_cast %30 : i32 to index
    %64 = memref.load %arg1[%63] : memref<4xf32, #tpu.memory_space<smem>>
    %65 = math.exp %64 : f32
    %cst_21 = arith.constant 1.000000e+00 : f32
    %66 = arith.divf %cst_21, %65 : f32
    %67 = vector.broadcast %66 : f32 to vector<8x128xf32>
    %68 = arith.mulf %61, %67 : vector<8x128xf32>
    %69 = math.tanh %68 : vector<8x128xf32>
    %70 = vector.broadcast %65 : f32 to vector<8x128xf32>
    %71 = arith.mulf %69, %70 : vector<8x128xf32>
    %72 = math.exp %71 : vector<8x128xf32>
    %73 = arith.mulf %72, %19 : vector<8x128xf32>
    %74 = arith.addf %73, %62 : vector<8x128xf32>
    %cst_22 = arith.constant dense<0.000000e+00> : vector<8xf32>
    %75 = vector.multi_reduction <add>, %71, %cst_22 [1] : vector<8x128xf32> to vector<8xf32>
    %76 = vector.shape_cast %75 : vector<8xf32> to vector<8x1xf32>
    %c2_i32_23 = arith.constant 2 : i32
    %77 = arith.muli %c2_i32_23, %c0_i32 : i32
    %c1_i32 = arith.constant 1 : i32
    %78 = arith.addi %77, %c1_i32 : i32
    %79 = vector.extract_strided_slice %5 {offsets = [5, 0], sizes = [1, 128], strides = [1, 1]} : vector<8x128xf32> to vector<1x128xf32>
    %80 = vector.extract_strided_slice %5 {offsets = [7, 0], sizes = [1, 128], strides = [1, 1]} : vector<8x128xf32> to vector<1x128xf32>
    %81 = arith.truncf %74 : vector<8x128xf32> to vector<8x128xbf16>
    %82 = arith.index_cast %78 : i32 to index
    %c0_24 = arith.constant 0 : index
    %c0_25 = arith.constant 0 : index
    %83 = vector.load %arg5[%82, %c0_24, %c0_25] : memref<4x128x128xbf16, #tpu.memory_space<vmem>>, vector<1x128x128xbf16>
    %84 = vector.shape_cast %83 : vector<1x128x128xbf16> to vector<128x128xbf16>
    %cst_26 = arith.constant dense<0.000000e+00> : vector<8x128xf32>
    %85 = tpu.matmul %81, %84, %cst_26 {dimension_numbers = #tpu.dot_dimension_numbers<[1], [0], [0], [1], [0, 0, 1, 1], [], []>} : vector<8x128xbf16>, vector<128x128xbf16>, vector<8x128xf32> -> vector<8x128xf32>
    %86 = vector.broadcast %79 : vector<1x128xf32> to vector<8x128xf32>
    %87 = arith.addf %85, %86 : vector<8x128xf32>
    %cst_27 = arith.constant 0.000000e+00 : f32
    %88 = vector.broadcast %cst_27 : f32 to vector<8x128xf32>
    %89 = arith.maximumf %87, %88 : vector<8x128xf32>
    %90 = arith.truncf %89 : vector<8x128xf32> to vector<8x128xbf16>
    %91 = arith.index_cast %78 : i32 to index
    %c0_28 = arith.constant 0 : index
    %c0_29 = arith.constant 0 : index
    %92 = vector.load %arg6[%91, %c0_28, %c0_29] : memref<4x128x128xbf16, #tpu.memory_space<vmem>>, vector<1x128x128xbf16>
    %93 = vector.shape_cast %92 : vector<1x128x128xbf16> to vector<128x128xbf16>
    %cst_30 = arith.constant dense<0.000000e+00> : vector<8x128xf32>
    %94 = tpu.matmul %90, %93, %cst_30 {dimension_numbers = #tpu.dot_dimension_numbers<[1], [0], [0], [1], [0, 0, 1, 1], [], []>} : vector<8x128xbf16>, vector<128x128xbf16>, vector<8x128xf32> -> vector<8x128xf32>
    %95 = vector.broadcast %80 : vector<1x128xf32> to vector<8x128xf32>
    %96 = arith.addf %94, %95 : vector<8x128xf32>
    %cst_31 = arith.constant 0.000000e+00 : f32
    %97 = vector.broadcast %cst_31 : f32 to vector<8x128xf32>
    %98 = arith.maximumf %96, %97 : vector<8x128xf32>
    %99 = arith.truncf %98 : vector<8x128xf32> to vector<8x128xbf16>
    %100 = arith.index_cast %78 : i32 to index
    %c0_32 = arith.constant 0 : index
    %c0_33 = arith.constant 0 : index
    %101 = vector.load %arg7[%100, %c0_32, %c0_33] : memref<4x128x256xbf16, #tpu.memory_space<vmem>>, vector<1x128x256xbf16>
    %102 = vector.shape_cast %101 : vector<1x128x256xbf16> to vector<128x256xbf16>
    %cst_34 = arith.constant dense<0.000000e+00> : vector<8x256xf32>
    %103 = tpu.matmul %99, %102, %cst_34 {dimension_numbers = #tpu.dot_dimension_numbers<[1], [0], [0], [1], [0, 0, 1, 1], [], []>} : vector<8x128xbf16>, vector<128x256xbf16>, vector<8x256xf32> -> vector<8x256xf32>
    %104 = arith.index_cast %78 : i32 to index
    %c0_35 = arith.constant 0 : index
    %c0_36 = arith.constant 0 : index
    %105 = vector.load %arg8[%104, %c0_35, %c0_36] : memref<4x1x256xf32, #tpu.memory_space<vmem>>, vector<1x1x256xf32>
    %106 = vector.shape_cast %105 : vector<1x1x256xf32> to vector<1x256xf32>
    %107 = vector.broadcast %106 : vector<1x256xf32> to vector<8x256xf32>
    %108 = arith.addf %103, %107 : vector<8x256xf32>
    %109 = vector.extract_strided_slice %108 {offsets = [0, 0], sizes = [8, 128], strides = [1, 1]} : vector<8x256xf32> to vector<8x128xf32>
    %110 = vector.extract_strided_slice %108 {offsets = [0, 128], sizes = [8, 128], strides = [1, 1]} : vector<8x256xf32> to vector<8x128xf32>
    %111 = arith.index_cast %78 : i32 to index
    %112 = memref.load %arg1[%111] : memref<4xf32, #tpu.memory_space<smem>>
    %113 = math.exp %112 : f32
    %cst_37 = arith.constant 1.000000e+00 : f32
    %114 = arith.divf %cst_37, %113 : f32
    %115 = vector.broadcast %114 : f32 to vector<8x128xf32>
    %116 = arith.mulf %109, %115 : vector<8x128xf32>
    %117 = math.tanh %116 : vector<8x128xf32>
    %118 = vector.broadcast %113 : f32 to vector<8x128xf32>
    %119 = arith.mulf %117, %118 : vector<8x128xf32>
    %120 = math.exp %119 : vector<8x128xf32>
    %121 = arith.mulf %120, %14 : vector<8x128xf32>
    %122 = arith.addf %121, %110 : vector<8x128xf32>
    %cst_38 = arith.constant dense<0.000000e+00> : vector<8xf32>
    %123 = vector.multi_reduction <add>, %119, %cst_38 [1] : vector<8x128xf32> to vector<8xf32>
    %124 = vector.shape_cast %123 : vector<8xf32> to vector<8x1xf32>
    %125 = vector.broadcast %28 : f32 to vector<8x1xf32>
    %126 = arith.addf %2, %125 : vector<8x1xf32>
    %127 = arith.addf %126, %76 : vector<8x1xf32>
    %128 = arith.addf %127, %124 : vector<8x1xf32>
    %c1_i32_39 = arith.constant 1 : i32
    %129 = arith.index_cast %c1_i32_39 : i32 to index
    %c0_40 = arith.constant 0 : index
    %c0_41 = arith.constant 0 : index
    %130 = vector.load %arg4[%129, %c0_40, %c0_41] : memref<2x8x128xf32, #tpu.memory_space<vmem>>, vector<1x8x128xf32>
    %131 = vector.shape_cast %130 : vector<1x8x128xf32> to vector<8x128xf32>
    %132 = vector.extract_strided_slice %131 {offsets = [0, 0], sizes = [1, 128], strides = [1, 1]} : vector<8x128xf32> to vector<1x128xf32>
    %133 = vector.extract_strided_slice %131 {offsets = [1, 0], sizes = [1, 128], strides = [1, 1]} : vector<8x128xf32> to vector<1x128xf32>
    %134 = vector.extract_strided_slice %131 {offsets = [2, 0], sizes = [1, 128], strides = [1, 1]} : vector<8x128xf32> to vector<1x128xf32>
    %135 = vector.extract_strided_slice %131 {offsets = [3, 0], sizes = [1, 128], strides = [1, 1]} : vector<8x128xf32> to vector<1x128xf32>
    %136 = math.exp %132 : vector<1x128xf32>
    %137 = vector.broadcast %136 : vector<1x128xf32> to vector<8x128xf32>
    %138 = arith.mulf %122, %137 : vector<8x128xf32>
    %139 = vector.broadcast %133 : vector<1x128xf32> to vector<8x128xf32>
    %140 = arith.addf %138, %139 : vector<8x128xf32>
    %141 = math.exp %134 : vector<1x128xf32>
    %142 = vector.broadcast %141 : vector<1x128xf32> to vector<8x128xf32>
    %143 = arith.mulf %74, %142 : vector<8x128xf32>
    %144 = vector.broadcast %135 : vector<1x128xf32> to vector<8x128xf32>
    %145 = arith.addf %143, %144 : vector<8x128xf32>
    %146 = vector.shape_cast %132 : vector<1x128xf32> to vector<1x1x128xf32>
    %cst_42 = arith.constant dense<0.000000e+00> : vector<1xf32>
    %147 = vector.multi_reduction <add>, %146, %cst_42 [1, 2] : vector<1x1x128xf32> to vector<1xf32>
    %148 = vector.shape_cast %147 : vector<1xf32> to vector<1x1x1xf32>
    %149 = vector.extract %148[0, 0, 0] : f32 from vector<1x1x1xf32>
    %150 = vector.shape_cast %134 : vector<1x128xf32> to vector<1x1x128xf32>
    %cst_43 = arith.constant dense<0.000000e+00> : vector<1xf32>
    %151 = vector.multi_reduction <add>, %150, %cst_43 [1, 2] : vector<1x1x128xf32> to vector<1xf32>
    %152 = vector.shape_cast %151 : vector<1xf32> to vector<1x1x1xf32>
    %153 = vector.extract %152[0, 0, 0] : f32 from vector<1x1x1xf32>
    %154 = arith.addf %149, %153 : f32
    %c2_i32_44 = arith.constant 2 : i32
    %155 = arith.muli %c2_i32_44, %c1_i32_39 : i32
    %c0_i32_45 = arith.constant 0 : i32
    %156 = arith.addi %155, %c0_i32_45 : i32
    %157 = vector.extract_strided_slice %131 {offsets = [4, 0], sizes = [1, 128], strides = [1, 1]} : vector<8x128xf32> to vector<1x128xf32>
    %158 = vector.extract_strided_slice %131 {offsets = [6, 0], sizes = [1, 128], strides = [1, 1]} : vector<8x128xf32> to vector<1x128xf32>
    %159 = arith.truncf %140 : vector<8x128xf32> to vector<8x128xbf16>
    %160 = arith.index_cast %156 : i32 to index
    %c0_46 = arith.constant 0 : index
    %c0_47 = arith.constant 0 : index
    %161 = vector.load %arg5[%160, %c0_46, %c0_47] : memref<4x128x128xbf16, #tpu.memory_space<vmem>>, vector<1x128x128xbf16>
    %162 = vector.shape_cast %161 : vector<1x128x128xbf16> to vector<128x128xbf16>
    %cst_48 = arith.constant dense<0.000000e+00> : vector<8x128xf32>
    %163 = tpu.matmul %159, %162, %cst_48 {dimension_numbers = #tpu.dot_dimension_numbers<[1], [0], [0], [1], [0, 0, 1, 1], [], []>} : vector<8x128xbf16>, vector<128x128xbf16>, vector<8x128xf32> -> vector<8x128xf32>
    %164 = vector.broadcast %157 : vector<1x128xf32> to vector<8x128xf32>
    %165 = arith.addf %163, %164 : vector<8x128xf32>
    %cst_49 = arith.constant 0.000000e+00 : f32
    %166 = vector.broadcast %cst_49 : f32 to vector<8x128xf32>
    %167 = arith.maximumf %165, %166 : vector<8x128xf32>
    %168 = arith.truncf %167 : vector<8x128xf32> to vector<8x128xbf16>
    %169 = arith.index_cast %156 : i32 to index
    %c0_50 = arith.constant 0 : index
    %c0_51 = arith.constant 0 : index
    %170 = vector.load %arg6[%169, %c0_50, %c0_51] : memref<4x128x128xbf16, #tpu.memory_space<vmem>>, vector<1x128x128xbf16>
    %171 = vector.shape_cast %170 : vector<1x128x128xbf16> to vector<128x128xbf16>
    %cst_52 = arith.constant dense<0.000000e+00> : vector<8x128xf32>
    %172 = tpu.matmul %168, %171, %cst_52 {dimension_numbers = #tpu.dot_dimension_numbers<[1], [0], [0], [1], [0, 0, 1, 1], [], []>} : vector<8x128xbf16>, vector<128x128xbf16>, vector<8x128xf32> -> vector<8x128xf32>
    %173 = vector.broadcast %158 : vector<1x128xf32> to vector<8x128xf32>
    %174 = arith.addf %172, %173 : vector<8x128xf32>
    %cst_53 = arith.constant 0.000000e+00 : f32
    %175 = vector.broadcast %cst_53 : f32 to vector<8x128xf32>
    %176 = arith.maximumf %174, %175 : vector<8x128xf32>
    %177 = arith.truncf %176 : vector<8x128xf32> to vector<8x128xbf16>
    %178 = arith.index_cast %156 : i32 to index
    %c0_54 = arith.constant 0 : index
    %c0_55 = arith.constant 0 : index
    %179 = vector.load %arg7[%178, %c0_54, %c0_55] : memref<4x128x256xbf16, #tpu.memory_space<vmem>>, vector<1x128x256xbf16>
    %180 = vector.shape_cast %179 : vector<1x128x256xbf16> to vector<128x256xbf16>
    %cst_56 = arith.constant dense<0.000000e+00> : vector<8x256xf32>
    %181 = tpu.matmul %177, %180, %cst_56 {dimension_numbers = #tpu.dot_dimension_numbers<[1], [0], [0], [1], [0, 0, 1, 1], [], []>} : vector<8x128xbf16>, vector<128x256xbf16>, vector<8x256xf32> -> vector<8x256xf32>
    %182 = arith.index_cast %156 : i32 to index
    %c0_57 = arith.constant 0 : index
    %c0_58 = arith.constant 0 : index
    %183 = vector.load %arg8[%182, %c0_57, %c0_58] : memref<4x1x256xf32, #tpu.memory_space<vmem>>, vector<1x1x256xf32>
    %184 = vector.shape_cast %183 : vector<1x1x256xf32> to vector<1x256xf32>
    %185 = vector.broadcast %184 : vector<1x256xf32> to vector<8x256xf32>
    %186 = arith.addf %181, %185 : vector<8x256xf32>
    %187 = vector.extract_strided_slice %186 {offsets = [0, 0], sizes = [8, 128], strides = [1, 1]} : vector<8x256xf32> to vector<8x128xf32>
    %188 = vector.extract_strided_slice %186 {offsets = [0, 128], sizes = [8, 128], strides = [1, 1]} : vector<8x256xf32> to vector<8x128xf32>
    %189 = arith.index_cast %156 : i32 to index
    %190 = memref.load %arg1[%189] : memref<4xf32, #tpu.memory_space<smem>>
    %191 = math.exp %190 : f32
    %cst_59 = arith.constant 1.000000e+00 : f32
    %192 = arith.divf %cst_59, %191 : f32
    %193 = vector.broadcast %192 : f32 to vector<8x128xf32>
    %194 = arith.mulf %187, %193 : vector<8x128xf32>
    %195 = math.tanh %194 : vector<8x128xf32>
    %196 = vector.broadcast %191 : f32 to vector<8x128xf32>
    %197 = arith.mulf %195, %196 : vector<8x128xf32>
    %198 = math.exp %197 : vector<8x128xf32>
    %199 = arith.mulf %198, %145 : vector<8x128xf32>
    %200 = arith.addf %199, %188 : vector<8x128xf32>
    %cst_60 = arith.constant dense<0.000000e+00> : vector<8xf32>
    %201 = vector.multi_reduction <add>, %197, %cst_60 [1] : vector<8x128xf32> to vector<8xf32>
    %202 = vector.shape_cast %201 : vector<8xf32> to vector<8x1xf32>
    %c2_i32_61 = arith.constant 2 : i32
    %203 = arith.muli %c2_i32_61, %c1_i32_39 : i32
    %c1_i32_62 = arith.constant 1 : i32
    %204 = arith.addi %203, %c1_i32_62 : i32
    %205 = vector.extract_strided_slice %131 {offsets = [5, 0], sizes = [1, 128], strides = [1, 1]} : vector<8x128xf32> to vector<1x128xf32>
    %206 = vector.extract_strided_slice %131 {offsets = [7, 0], sizes = [1, 128], strides = [1, 1]} : vector<8x128xf32> to vector<1x128xf32>
    %207 = arith.truncf %200 : vector<8x128xf32> to vector<8x128xbf16>
    %208 = arith.index_cast %204 : i32 to index
    %c0_63 = arith.constant 0 : index
    %c0_64 = arith.constant 0 : index
    %209 = vector.load %arg5[%208, %c0_63, %c0_64] : memref<4x128x128xbf16, #tpu.memory_space<vmem>>, vector<1x128x128xbf16>
    %210 = vector.shape_cast %209 : vector<1x128x128xbf16> to vector<128x128xbf16>
    %cst_65 = arith.constant dense<0.000000e+00> : vector<8x128xf32>
    %211 = tpu.matmul %207, %210, %cst_65 {dimension_numbers = #tpu.dot_dimension_numbers<[1], [0], [0], [1], [0, 0, 1, 1], [], []>} : vector<8x128xbf16>, vector<128x128xbf16>, vector<8x128xf32> -> vector<8x128xf32>
    %212 = vector.broadcast %205 : vector<1x128xf32> to vector<8x128xf32>
    %213 = arith.addf %211, %212 : vector<8x128xf32>
    %cst_66 = arith.constant 0.000000e+00 : f32
    %214 = vector.broadcast %cst_66 : f32 to vector<8x128xf32>
    %215 = arith.maximumf %213, %214 : vector<8x128xf32>
    %216 = arith.truncf %215 : vector<8x128xf32> to vector<8x128xbf16>
    %217 = arith.index_cast %204 : i32 to index
    %c0_67 = arith.constant 0 : index
    %c0_68 = arith.constant 0 : index
    %218 = vector.load %arg6[%217, %c0_67, %c0_68] : memref<4x128x128xbf16, #tpu.memory_space<vmem>>, vector<1x128x128xbf16>
    %219 = vector.shape_cast %218 : vector<1x128x128xbf16> to vector<128x128xbf16>
    %cst_69 = arith.constant dense<0.000000e+00> : vector<8x128xf32>
    %220 = tpu.matmul %216, %219, %cst_69 {dimension_numbers = #tpu.dot_dimension_numbers<[1], [0], [0], [1], [0, 0, 1, 1], [], []>} : vector<8x128xbf16>, vector<128x128xbf16>, vector<8x128xf32> -> vector<8x128xf32>
    %221 = vector.broadcast %206 : vector<1x128xf32> to vector<8x128xf32>
    %222 = arith.addf %220, %221 : vector<8x128xf32>
    %cst_70 = arith.constant 0.000000e+00 : f32
    %223 = vector.broadcast %cst_70 : f32 to vector<8x128xf32>
    %224 = arith.maximumf %222, %223 : vector<8x128xf32>
    %225 = arith.truncf %224 : vector<8x128xf32> to vector<8x128xbf16>
    %226 = arith.index_cast %204 : i32 to index
    %c0_71 = arith.constant 0 : index
    %c0_72 = arith.constant 0 : index
    %227 = vector.load %arg7[%226, %c0_71, %c0_72] : memref<4x128x256xbf16, #tpu.memory_space<vmem>>, vector<1x128x256xbf16>
    %228 = vector.shape_cast %227 : vector<1x128x256xbf16> to vector<128x256xbf16>
    %cst_73 = arith.constant dense<0.000000e+00> : vector<8x256xf32>
    %229 = tpu.matmul %225, %228, %cst_73 {dimension_numbers = #tpu.dot_dimension_numbers<[1], [0], [0], [1], [0, 0, 1, 1], [], []>} : vector<8x128xbf16>, vector<128x256xbf16>, vector<8x256xf32> -> vector<8x256xf32>
    %230 = arith.index_cast %204 : i32 to index
    %c0_74 = arith.constant 0 : index
    %c0_75 = arith.constant 0 : index
    %231 = vector.load %arg8[%230, %c0_74, %c0_75] : memref<4x1x256xf32, #tpu.memory_space<vmem>>, vector<1x1x256xf32>
    %232 = vector.shape_cast %231 : vector<1x1x256xf32> to vector<1x256xf32>
    %233 = vector.broadcast %232 : vector<1x256xf32> to vector<8x256xf32>
    %234 = arith.addf %229, %233 : vector<8x256xf32>
    %235 = vector.extract_strided_slice %234 {offsets = [0, 0], sizes = [8, 128], strides = [1, 1]} : vector<8x256xf32> to vector<8x128xf32>
    %236 = vector.extract_strided_slice %234 {offsets = [0, 128], sizes = [8, 128], strides = [1, 1]} : vector<8x256xf32> to vector<8x128xf32>
    %237 = arith.index_cast %204 : i32 to index
    %238 = memref.load %arg1[%237] : memref<4xf32, #tpu.memory_space<smem>>
    %239 = math.exp %238 : f32
    %cst_76 = arith.constant 1.000000e+00 : f32
    %240 = arith.divf %cst_76, %239 : f32
    %241 = vector.broadcast %240 : f32 to vector<8x128xf32>
    %242 = arith.mulf %235, %241 : vector<8x128xf32>
    %243 = math.tanh %242 : vector<8x128xf32>
    %244 = vector.broadcast %239 : f32 to vector<8x128xf32>
    %245 = arith.mulf %243, %244 : vector<8x128xf32>
    %246 = math.exp %245 : vector<8x128xf32>
    %247 = arith.mulf %246, %140 : vector<8x128xf32>
    %248 = arith.addf %247, %236 : vector<8x128xf32>
    %cst_77 = arith.constant dense<0.000000e+00> : vector<8xf32>
    %249 = vector.multi_reduction <add>, %245, %cst_77 [1] : vector<8x128xf32> to vector<8xf32>
    %250 = vector.shape_cast %249 : vector<8xf32> to vector<8x1xf32>
    %251 = vector.broadcast %154 : f32 to vector<8x1xf32>
    %252 = arith.addf %128, %251 : vector<8x1xf32>
    %253 = arith.addf %252, %202 : vector<8x1xf32>
    %254 = arith.addf %253, %250 : vector<8x1xf32>
    %c2_i32_78 = arith.constant 2 : i32
    %cst_79 = arith.constant 6.28318548 : f32
    %255 = math.log %cst_79 : f32
    %cst_80 = arith.constant -5.000000e-01 : f32
    %256 = arith.mulf %cst_80, %255 : f32
    %257 = arith.mulf %200, %200 : vector<8x128xf32>
    %cst_81 = arith.constant dense<0.000000e+00> : vector<8xf32>
    %258 = vector.multi_reduction <add>, %257, %cst_81 [1] : vector<8x128xf32> to vector<8xf32>
    %259 = vector.shape_cast %258 : vector<8xf32> to vector<8x1xf32>
    %cst_82 = arith.constant 5.000000e-01 : f32
    %260 = vector.broadcast %cst_82 : f32 to vector<8x1xf32>
    %261 = arith.mulf %260, %259 : vector<8x1xf32>
    %262 = arith.subf %254, %261 : vector<8x1xf32>
    %263 = arith.mulf %248, %248 : vector<8x128xf32>
    %cst_83 = arith.constant dense<0.000000e+00> : vector<8xf32>
    %264 = vector.multi_reduction <add>, %263, %cst_83 [1] : vector<8x128xf32> to vector<8xf32>
    %265 = vector.shape_cast %264 : vector<8xf32> to vector<8x1xf32>
    %cst_84 = arith.constant 5.000000e-01 : f32
    %266 = vector.broadcast %cst_84 : f32 to vector<8x1xf32>
    %267 = arith.mulf %266, %265 : vector<8x1xf32>
    %268 = arith.subf %262, %267 : vector<8x1xf32>
    %cst_85 = arith.constant 8.000000e+00 : f32
    %269 = arith.mulf %cst_85, %256 : f32
    %270 = vector.broadcast %269 : f32 to vector<8x1xf32>
    %271 = arith.addf %268, %270 : vector<8x1xf32>
    %c0_86 = arith.constant 0 : index
    %c0_87 = arith.constant 0 : index
    %272 = vector.load %arg9[%c0_86, %c0_87] : memref<8x1xf32, #tpu.memory_space<vmem>>, vector<8x1xf32>
    tpu.vector_store %arg9[%c0_86, %c0_87], %271 {strides = array<i32>} : memref<8x1xf32, #tpu.memory_space<vmem>>, vector<8x1xf32>,
    return
  }
  func.func @transform_0(%arg0: i32) -> i32 {
    %c0_i32 = arith.constant 0 : i32
    %c0_i32_0 = arith.constant 0 : i32
    return %c0_i32 : i32
  }
  func.func @transform_1(%arg0: i32) -> (i32, i32) {
    %c0_i32 = arith.constant 0 : i32
    %c0_i32_0 = arith.constant 0 : i32
    return %arg0, %c0_i32 : i32, i32
  }
  func.func @transform_2(%arg0: i32) -> (i32, i32) {
    %c0_i32 = arith.constant 0 : i32
    %c0_i32_0 = arith.constant 0 : i32
    return %arg0, %c0_i32 : i32, i32
  }
  func.func @transform_3(%arg0: i32) -> (i32, i32, i32) {
    %c0_i32 = arith.constant 0 : i32
    %c0_i32_0 = arith.constant 0 : i32
    %c0_i32_1 = arith.constant 0 : i32
    %c0_i32_2 = arith.constant 0 : i32
    return %c0_i32, %c0_i32_0, %c0_i32_1 : i32, i32, i32
  }
  func.func @transform_4(%arg0: i32) -> (i32, i32, i32) {
    %c0_i32 = arith.constant 0 : i32
    %c0_i32_0 = arith.constant 0 : i32
    %c0_i32_1 = arith.constant 0 : i32
    %c0_i32_2 = arith.constant 0 : i32
    return %c0_i32, %c0_i32_0, %c0_i32_1 : i32, i32, i32
  }
  func.func @transform_5(%arg0: i32) -> (i32, i32, i32) {
    %c0_i32 = arith.constant 0 : i32
    %c0_i32_0 = arith.constant 0 : i32
    %c0_i32_1 = arith.constant 0 : i32
    %c0_i32_2 = arith.constant 0 : i32
    return %c0_i32, %c0_i32_0, %c0_i32_1 : i32, i32, i32
  }
  func.func @transform_6(%arg0: i32) -> (i32, i32, i32) {
    %c0_i32 = arith.constant 0 : i32
    %c0_i32_0 = arith.constant 0 : i32
    %c0_i32_1 = arith.constant 0 : i32
    %c0_i32_2 = arith.constant 0 : i32
    return %c0_i32, %c0_i32_0, %c0_i32_1 : i32, i32, i32
  }
  func.func @transform_7(%arg0: i32) -> (i32, i32, i32) {
    %c0_i32 = arith.constant 0 : i32
    %c0_i32_0 = arith.constant 0 : i32
    %c0_i32_1 = arith.constant 0 : i32
    %c0_i32_2 = arith.constant 0 : i32
    return %c0_i32, %c0_i32_0, %c0_i32_1 : i32, i32, i32
  }
  func.func @transform_8(%arg0: i32) -> (i32, i32) {
    %c0_i32 = arith.constant 0 : i32
    %c0_i32_0 = arith.constant 0 : i32
    return %arg0, %c0_i32 : i32, i32
  }
}

</mosaic_0001>

<bundles_post_ra>
// kernel: tpu_custom_call.1
= control target key start
LH: loop header
LB: loop body
LE: loop exit
PB: predicated region body
PF: predicated region fallthrough
CT: control target
= control target key end

     0   :  { %s3777_s0 = inlined_call_operand.hbm [shape: f32[4], index: 0, kind: input, shape index: {}]   ;;  %s3778_s1 = inlined_call_operand.hbm [shape: f32[16,128], index: 1, kind: input, shape index: {}]   ;;  %s3779_s2 = inlined_call_operand.hbm [shape: f32[16,128], index: 2, kind: input, shape index: {}]   ;;  %s3780_s3 = inlined_call_operand.hbm [shape: f32[2,8,128], index: 3, kind: input, shape index: {}]   ;;  %s3781_s4 = inlined_call_operand.hbm [shape: bf16[4,128,128], index: 4, kind: input, shape index: {}]   ;;  %s3782_s5 = inlined_call_operand.hbm [shape: bf16[4,128,128], index: 5, kind: input, shape index: {}]   ;;  %s3783_s6 = inlined_call_operand.hbm [shape: bf16[4,128,256], index: 6, kind: input, shape index: {}]   ;;  %s3784_s7 = inlined_call_operand.vmem [shape: f32[4,1,256], index: 7, kind: input, shape index: {}]   ;;  %s3785_s8 = inlined_call_operand.vmem [shape: f32[16,1], index: 8, kind: output, shape index: {}]  }
   0x1   :  { %3792 = sst [smem:[#allocation20_spill]] %s3777_s0 }
   0x2   :  { %3793 = sst [smem:[#allocation21_spill]] %s3780_s3 }
   0x3   :  { %13 = vsyncpa [#allocation4], 0 }
   0x4   :  { %14 = vsyncpa [#allocation3], 0 }
   0x5   :  { %16 = vsyncpa [#allocation3 + $0x1], 0 }
   0x6   :  { %17 = vsyncpa [#allocation7], 0 }
   0x7   :  { %19 = vsyncpa [#allocation7 + $0x1], 0 }
   0x8   :  { %20 = vsyncpa [#allocation10], 0 }
   0x9   :  { %21 = vsyncpa [#allocation13], 0  ;;  %s3265_s27 = smov 0   ;;  %s3267_s28 = smov 0  }
   0xa   :  { %s3269_s29 = smov 0   ;;  %s3271_s30 = smov 0  }
   0xb LB: > { %s3206_s9 = smov [#allocation8]   ;;  %s3286_s11 = sadd.s32 4294967295, %s3204_s30   ;;  %s3204_s30 = sphi %s3271_s30, %s3818_s30   ;;  %s3200_s29 = sphi %s3269_s29, %s3817_s29   ;;  %s3196_s28 = sphi %s3267_s28, %s3816_s28   ;;  %s3192_s27 = sphi %s3265_s27, %s3815_s27  }
   0xc   : > { %s257_s10 = sshll.u32 %s3206_s9, 4  ;;  %p2255_p0 = scmp.ge.s32.totalorder %s3204_s30, 1  ;;  %s3291_s10 = int_to_ptr.vmem [resolvable:$true] %s257_s10 }
   0xd   : > { %p3789_p1 = scmp.eq.s32.totalorder %s3286_s11, 0  ;;  %p236_p2 = scmp.lt.s32.totalorder %s3204_s30, 3 }
   0xe   : > { %s3207_s13 = smov [#allocation9]   ;;  %s3796_s3 = sld [smem:[#allocation21_spill]] }
   0xf   : > { %p3293_p3 = pnand %p2255_p0, %p236_p2  ;;  %s270_s14 = sshll.u32 %s3207_s13, 4  ;;  %s3305_s14 = int_to_ptr.vmem [resolvable:$true] %s270_s14 }
  0x11   : > { %s3794_s12 = scalar_select %p3293_p3, 1, 0 }
  0x12   : > { %p2691_p4 = pneg %p3293_p3 }
  0x14   : > { %p3301_p5 = pnand %p2691_p4, %p3789_p1  ;;  %s2965_s18 = scalar_lea.hbm %s3796_s3, 256 }
  0x15   : > { %p2966_p6 = scmp.ne.s32.totalorder %s3796_s3, %s2965_s18  ;;  %p2972_p10 = scmp.lt.u32.totalorder %s2965_s18, %s3796_s3 }
  0x16   : > { %p3315_p7 = pneg %p3301_p5 }
  0x18   : > { %p2968_p8 = pnand %p3315_p7, %p2966_p6 }
  0x1a   : > { %p2969_p9 = pneg %p2968_p8 }
  0x1c   : > { %p2974_p11 = pnand %p2972_p10, %p2969_p9 }
  0x1e   : > { %2977 = shalt.err (!%p2974_p11)
}
  0x1f   : > { %s2978_s24 = scalar_lea.vmem %s3291_s10, 256  ;;  %p2986_p2 = scmp.lt.s32.totalorder %s3291_s10, %s3291_s10 }
  0x20   : > { %p2979_p12 = scmp.ne.s32.totalorder %s3291_s10, %s2978_s24  ;;  %p2987_p4 = scmp.lt.s32.totalorder %s2978_s24, %s2978_s24 }
  0x22   : > { %p2981_p13 = pnand %p2979_p12, %p3315_p7  ;;  %p2988_p6 = por %p2987_p4, %p2986_p2 }
  0x24   : > { %p2982_p0 = pneg %p2981_p13 }
  0x26   : > { %p2989_p8 = pnand %p2988_p6, %p2982_p0 }
  0x28   : > { %2992 = shalt.err (!%p2989_p8)
}
  0x29   : > { %s3786_s25 = smov 128   ;;  %s3787_s26 = smov 8  }
  0x2a   : > { %2697 = dma.hbm_to_vmem [thread:$0]  (!%p3301_p5), %s3796_s3, 256, %s3291_s10, [#allocation7], %s3786_s25, %s3786_s25, %s3787_s26  }
  0x2b   : > { %s2993_s18 = scalar_lea.hbm %s3781_s4, 4096 }
  0x2c   : > { %p2994_p9 = scmp.ne.s32.totalorder %s3781_s4, %s2993_s18  ;;  %p3000_p12 = scmp.lt.u32.totalorder %s2993_s18, %s3781_s4 }
  0x2e   : > { %p2996_p10 = pnand %p2994_p9, %p3315_p7 }
  0x30   : > { %p2997_p11 = pneg %p2996_p10 }
  0x32   : > { %p3002_p13 = pnand %p3000_p12, %p2997_p11 }
  0x34   : > { %3005 = shalt.err (!%p3002_p13)
}
  0x35   : > { %s3006_s10 = scalar_lea.vmem %s3305_s14, 4096  ;;  %p3014_p6 = scmp.lt.s32.totalorder %s3305_s14, %s3305_s14 }
  0x36   : > { %p3007_p0 = scmp.ne.s32.totalorder %s3305_s14, %s3006_s10  ;;  %p3015_p8 = scmp.lt.s32.totalorder %s3006_s10, %s3006_s10 }
  0x38   : > { %p3009_p2 = pnand %p3007_p0, %p3315_p7  ;;  %p3016_p9 = por %p3015_p8, %p3014_p6 }
  0x3a   : > { %p3010_p4 = pneg %p3009_p2 }
  0x3c   : > { %p3017_p10 = pnand %p3016_p9, %p3010_p4 }
  0x3e   : > { %3020 = shalt.err (!%p3017_p10)
}
  0x3f   : > { %s3788_s24 = smov 64   ;;  %s3211_s9 = smov 4  }
  0x40   : > { %2700 = dma.hbm_to_vmem [thread:$0]  (!%p3301_p5), %s3781_s4, 4096, %s3305_s14, [#allocation10], %s3788_s24, %s3788_s24, %s3211_s9  }
  0x41   : > { %s3798_s0 = sld [smem:[#allocation20_spill]] }
  0x47   : > { %s3021_s19 = scalar_lea.hbm %s3798_s0, 16 }
  0x48   : > { %p3022_p11 = scmp.ne.s32.totalorder %s3798_s0, %s3021_s19  ;;  %p3028_p0 = scmp.lt.u32.totalorder %s3021_s19, %s3798_s0 }
  0x4a   : > { %p3024_p12 = pnand %p3022_p11, %p3315_p7 }
  0x4c   : > { %p3025_p13 = pneg %p3024_p12 }
  0x4e   : > { %p3030_p2 = pnand %p3028_p0, %p3025_p13 }
  0x50   : > { %3033 = shalt.err (!%p3030_p2)
}
  0x51   : > { %s3212_s25 = smov [#allocation2]   ;;  %s3213_s16 = smov [#allocation11]  }
  0x52   : > { %2694 = dma.hbm_to_smem (!%p3301_p5), %s3798_s0, 16, %s3212_s25, [#allocation4]  }
  0x53   : > { %s283_s17 = sshll.u32 %s3213_s16, 4  ;;  %s3214_s18 = smov [#allocation12]   ;;  %s284_s17 = int_to_ptr.vmem [resolvable:$true] %s283_s17 }
  0x54   : > { %s296_s20 = sshll.u32 %s3214_s18, 4  ;;  %s3034_s23 = scalar_lea.hbm %s3782_s5, 4096  ;;  %s297_s20 = int_to_ptr.vmem [resolvable:$true] %s296_s20 }
  0x55   : > { %p3035_p4 = scmp.ne.s32.totalorder %s3782_s5, %s3034_s23  ;;  %p3041_p9 = scmp.lt.u32.totalorder %s3034_s23, %s3782_s5 }
  0x57   : > { %p3037_p6 = pnand %p3035_p4, %p3315_p7 }
  0x59   : > { %p3038_p8 = pneg %p3037_p6 }
  0x5b   : > { %p3043_p10 = pnand %p3041_p9, %p3038_p8 }
  0x5d   : > { %3046 = shalt.err (!%p3043_p10)
}
  0x5e   : > { %s3047_s25 = scalar_lea.vmem %s284_s17, 4096  ;;  %p3055_p0 = scmp.lt.s32.totalorder %s284_s17, %s284_s17 }
  0x5f   : > { %p3048_p11 = scmp.ne.s32.totalorder %s284_s17, %s3047_s25  ;;  %p3056_p2 = scmp.lt.s32.totalorder %s3047_s25, %s3047_s25 }
  0x61   : > { %p3050_p12 = pnand %p3048_p11, %p3315_p7  ;;  %p3057_p1 = por %p3056_p2, %p3055_p0 }
  0x63   : > { %p3051_p13 = pneg %p3050_p12 }
  0x65   : > { %p3058_p3 = pnand %p3057_p1, %p3051_p13 }
  0x67   : > { %3061 = shalt.err (!%p3058_p3)
}
  0x68   : > { %s3799_s26 = smov 64   ;;  %s3062_s22 = scalar_lea.hbm %s3783_s6, 8192 }
  0x69   : > { %2703 = dma.hbm_to_vmem [thread:$0]  (!%p3301_p5), %s3782_s5, 4096, %s284_s17, [#allocation10], %s3799_s26, %s3799_s26, %s3211_s9  }
  0x6a   : > { %p3063_p1 = scmp.ne.s32.totalorder %s3783_s6, %s3062_s22  ;;  %p3069_p6 = scmp.lt.u32.totalorder %s3062_s22, %s3783_s6 }
  0x6c   : > { %p3065_p3 = pnand %p3063_p1, %p3315_p7 }
  0x6e   : > { %p3066_p4 = pneg %p3065_p3 }
  0x70   : > { %p3071_p8 = pnand %p3069_p6, %p3066_p4 }
  0x72   : > { %3074 = shalt.err (!%p3071_p8)
}
  0x73   : > { %s3075_s25 = scalar_lea.vmem %s297_s20, 8192  ;;  %p3083_p12 = scmp.lt.s32.totalorder %s297_s20, %s297_s20 }
  0x74   : > { %p3076_p9 = scmp.ne.s32.totalorder %s297_s20, %s3075_s25  ;;  %p3084_p13 = scmp.lt.s32.totalorder %s3075_s25, %s3075_s25 }
  0x76   : > { %p3078_p10 = pnand %p3076_p9, %p3315_p7  ;;  %p3085_p0 = por %p3084_p13, %p3083_p12 }
  0x78   : > { %p3079_p11 = pneg %p3078_p10 }
  0x7a   : > { %p3086_p2 = pnand %p3085_p0, %p3079_p11 }
  0x7c   : > { %3089 = shalt.err (!%p3086_p2)
}
  0x7d   : > { %s3800_s9 = smov 8   ;;  %s3801_s17 = smov 128  }
  0x7e   : > { %2706 = dma.hbm_to_vmem [thread:$0]  (!%p3301_p5), %s3783_s6, 8192, %s297_s20, [#allocation13], %s3801_s17, %s3801_s17, %s3800_s9  }
  0x7f   : > { %s3424_s15 = sadd.s32 1, %s3204_s30   ;;  %s55_s13 = sadd.s32 1, %s3200_s29 }
  0x80   : > { %s52_s21 = ssub.s32 %s3204_s30, %s3424_s15  ;;  %p62_p1 = scmp.ne.s32.totalorder %s3200_s29, %s3196_s28 }
  0x81   : > { %p53_p7 = scmp.eq.s32.totalorder %s52_s21, 0  ;;  %p63_p3 = scmp.eq.s32.totalorder %s3204_s30, 0 }
  0x82   : > { %p68_p4 = scmp.ne.s32.totalorder %s3196_s28, %s3192_s27  ;;  %p3802_p8 = scmp.eq.s32.totalorder %s3286_s11, 0 }
  0x83   : > { %s3435_s16 = scalar_select %p53_p7, %s3200_s29, %s55_s13  }
  0x84   : > { %p64_p6 = por %p63_p3, %p62_p1  ;;  %p3439_p9 = por %p3802_p8, %p68_p4 }
  0x85   : > { %p2719_p10 = scmp.lt.s32.totalorder %s3204_s30, 2  ;;  %s313_s20 = sand.u32 1, %s3200_s29  }
  0x86   : > { %s3803_s18 = scalar_select %p3439_p9, 1, 0 }
  0x87   : > { %s3445_s22 = sshll.u32 %s313_s20, 3  ;;  %s2263_s23 = sshll.u32 %s3204_s30, 7 }
  0x88   : > { %s3451_s14 = scalar_lea.hbm %s3778_s1, %s2263_s23  ;;  %s317_s27 = scalar_lea.vmem [#allocation5], %s3445_s22 }
  0x89   : > { %s324_s25 = sshll.u32 %s317_s27, 4  ;;  %p3456_p5 = pnand %p2719_p10, %p64_p6  ;;  %s3454_s25 = int_to_ptr.vmem [resolvable:$true] %s324_s25 }
  0x8a   : > { %s3463_s24 = scalar_lea.hbm %s3779_s2, %s2263_s23  ;;  %s331_s21 = sand.u32 1, %s3204_s30  }
  0x8b   : > { %s314_s13 = scalar_lea.sflag [#allocation3], %s313_s20  ;;  %s3090_s19 = scalar_lea.hbm %s3451_s14, 128 }
  0x8c   : > { %p3091_p11 = scmp.ne.s32.totalorder %s3451_s14, %s3090_s19  ;;  %p3092_p12 = pneg %p3456_p5 }
  0x8d   : > { %s3095_s0 = scalar_lea.hbm %s3778_s1, 256  ;;  %p3096_p2 = scmp.lt.u32.totalorder %s3451_s14, %s3778_s1 }
  0x8e   : > { %p3093_p13 = pnand %p3092_p12, %p3091_p11  ;;  %p3097_p7 = scmp.lt.u32.totalorder %s3095_s0, %s3090_s19 }
  0x8f   : > { %p3099_p3 = scmp.lt.u32.totalorder %s3090_s19, %s3451_s14 }
  0x90   : > { %p3094_p0 = pneg %p3093_p13  ;;  %p3098_p1 = por %p3097_p7, %p3096_p2 }
  0x92   : > { %p3100_p4 = por %p3099_p3, %p3098_p1 }
  0x94   : > { %p3101_p6 = pnand %p3100_p4, %p3094_p0 }
  0x96   : > { %3104 = shalt.err (!%p3101_p6)
}
  0x97   : > { %s3105_s20 = scalar_lea.vmem %s3454_s25, 128  ;;  %s3215_s23 = smov [#allocation5]  }
  0x98   : > { %p3106_p8 = scmp.ne.s32.totalorder %s3454_s25, %s3105_s20  ;;  %s3110_s26 = sshll.u32 %s3215_s23, 4  ;;  %s3111_s26 = int_to_ptr.vmem [resolvable:$false] %s3110_s26 }
  0x99   : > { %s3112_s3 = scalar_lea.vmem %s3111_s26, 256  ;;  %p3113_p13 = scmp.lt.s32.totalorder %s3454_s25, %s3111_s26 }
  0x9a   : > { %p3108_p10 = pnand %p3106_p8, %p3092_p12  ;;  %p3114_p2 = scmp.lt.s32.totalorder %s3112_s3, %s3105_s20 }
  0x9c   : > { %p3109_p11 = pneg %p3108_p10  ;;  %p3115_p7 = por %p3114_p2, %p3113_p13 }
  0x9e   : > { %p3116_p1 = pnand %p3115_p7, %p3109_p11 }
  0xa0   : > { %3119 = shalt.err (!%p3116_p1)
}
  0xa1   : > { %2710 = dma.hbm_to_vmem [thread:$0]  (!%p3456_p5), %s3451_s14, 128, %s3454_s25, %s314_s13  }
  0xa2   : > { %s335_s0 = scalar_lea.vmem [#allocation6], %s3445_s22  ;;  %s332_s10 = scalar_lea.sflag [#allocation7], %s331_s21 }
  0xa3   : > { %s342_s19 = sshll.u32 %s335_s0, 4  ;;  %s3120_s27 = scalar_lea.hbm %s3463_s24, 128  ;;  %s343_s19 = int_to_ptr.vmem [resolvable:$true] %s342_s19 }
  0xa4   : > { %p3121_p0 = scmp.ne.s32.totalorder %s3463_s24, %s3120_s27  ;;  %s3125_s23 = scalar_lea.hbm %s3779_s2, 256 }
  0xa5   : > { %p3126_p6 = scmp.lt.u32.totalorder %s3463_s24, %s3779_s2  ;;  %p3127_p8 = scmp.lt.u32.totalorder %s3125_s23, %s3120_s27 }
  0xa6   : > { %p3123_p3 = pnand %p3121_p0, %p3092_p12  ;;  %p3129_p11 = scmp.lt.u32.totalorder %s3120_s27, %s3463_s24 }
  0xa7   : > { %p3128_p10 = por %p3127_p8, %p3126_p6 }
  0xa8   : > { %p3124_p4 = pneg %p3123_p3 }
  0xa9   : > { %p3130_p13 = por %p3129_p11, %p3128_p10 }
  0xab   : > { %p3131_p2 = pnand %p3130_p13, %p3124_p4 }
  0xad   : > { %3134 = shalt.err (!%p3131_p2)
}
  0xae   : > { %s3135_s30 = scalar_lea.vmem %s343_s19, 128  ;;  %s3216_s22 = smov [#allocation6]  }
  0xaf   : > { %p3136_p7 = scmp.ne.s32.totalorder %s343_s19, %s3135_s30  ;;  %s3140_s14 = sshll.u32 %s3216_s22, 4  ;;  %s3141_s14 = int_to_ptr.vmem [resolvable:$false] %s3140_s14 }
  0xb0   : > { %s3142_s25 = scalar_lea.vmem %s3141_s14, 256  ;;  %p3143_p3 = scmp.lt.s32.totalorder %s343_s19, %s3141_s14 }
  0xb1   : > { %p3138_p1 = pnand %p3136_p7, %p3092_p12  ;;  %p3144_p9 = scmp.lt.s32.totalorder %s3142_s25, %s3135_s30 }
  0xb3   : > { %p3139_p0 = pneg %p3138_p1  ;;  %p3145_p6 = por %p3144_p9, %p3143_p3 }
  0xb5   : > { %p3146_p8 = pnand %p3145_p6, %p3139_p0 }
  0xb7   : > { %3149 = shalt.err (!%p3146_p8)
}
  0xb8   : > { %2713 = dma.hbm_to_vmem [thread:$0]  (!%p3456_p5), %s3463_s24, 128, %s343_s19, %s332_s10  }
  0xb9   : > { %p3805_p4 = scmp.ne.s32.totalorder %s3794_s12, 0 }
  0xba   : > { %p3806_p10 = scmp.eq.s32.totalorder (!%p3805_p4), %s3286_s11, 0 }
  0xbb   : > { %351 = sbr.rel (%p3805_p4) target bundleno = 3136 (0xc40), region = 52 }
  0xc2   : > { %3167 = dma.done.wait (%p3806_p10), [#allocation4], 16   ;;  %p3807_p12 = pmov %p3806_p10 }
  0xc3   : > { %s357_s21 = sand.u32 1, %s3196_s28   ;;  %p3808_p9 = scmp.ne.s32.totalorder %s3803_s18, 0 }
  0xc4   : > { %3169 = vsyncadd (%p3807_p12), [#allocation4], 4294967280  ;;  %s3520_s13 = sshll.u32 %s357_s21, 3  ;;  %s358_s0 = scalar_lea.sflag [#allocation3], %s357_s21 }
  0xc5   : > { %s361_s27 = scalar_lea.vmem [#allocation5], %s3520_s13 }
  0xc6   : > { %3171 = dma.done.wait (%p3808_p9), %s358_s0, 128  }
  0xc7   : > { %3173 = vsyncadd (%p3808_p9), %s358_s0, 4294967168  ;;  %s366_s12 = sand.u32 1, %s3286_s11   ;;  %s370_s24 = scalar_lea.vmem [#allocation6], %s3520_s13 }
  0xc8   : > { %s367_s9 = scalar_lea.sflag [#allocation7], %s366_s12 }
  0xc9   : > { %3175 = dma.done.wait (%p3808_p9), %s367_s9, 128  }
  0xca   : > { %3177 = vsyncadd (%p3808_p9), %s367_s9, 4294967168  ;;  %p3809_p5 = pmov %p3806_p10 }
  0xcc   : > { %3179 = dma.done.wait (%p3809_p5), [#allocation7], 256   ;;  %p3810_p11 = pmov %p3809_p5 }
  0xcd   : > { %p3811_p13 = pmov %p3809_p5 }
  0xce   : > { %3181 = vsyncadd (%p3810_p11), [#allocation7], 4294967040 }
  0xcf   : > { %3183 = dma.done.wait (%p3811_p13), [#allocation10], 8192   ;;  %p3812_p2 = pmov %p3809_p5 }
  0xd1   : > { %3185 = vsyncadd (%p3812_p2), [#allocation10], 4294959104  ;;  %p3813_p7 = pmov %p3812_p2 }
  0xd2   : > { %p3814_p1 = pmov %p3812_p2 }
  0xd3   : > { %3187 = dma.done.wait (%p3813_p7), [#allocation13], 8192  }
  0xd4   : > { %3189 = vsyncadd (%p3814_p1), [#allocation13], 4294959104 }
  0xd5   : > { %391 = sfence }
  0xd6   : > { %v2769_v0 = vld [vmem:[#allocation9] sm:$0xff]   ;;  %v3217_v1 = vmov 0.0   ;;  %v2770_v2 = vld [vmem:[#allocation9 + $0x8] sm:$0xff]   ;;  %vm3218_vm0 = vmmov 0   ;;  %v2771_v3 = vld [vmem:[#allocation9 + $0x10] sm:$0xff]   ;;  %v434_v8 = vlaneseq  ;;  %vm454_vm1 = vcmask 1040384  }
  0xd7   : > { %2483 = vmatprep.subr.bf16.mxu0 %v3217_v1  ;;  %2503 = vmatprep.subr.bf16.mxu1 %v3217_v1  ;;  %v3553_v4 = vld [vmem:[#allocation8] sm:$0xff]  ;;  %v2772_v5 = vld [vmem:[#allocation9 + $0x18] sm:$0xff]   ;;  %v2777_v7 = vld [vmem:[#allocation11] sm:$0xff]   ;;  %v3219_v58 = vmov 0   ;;  %s849_s18 = sld [smem:[#allocation2]]  ;;  %s2340_s30 = sld [smem:[#allocation2 + $0x1]] }
  0xd8   : > { %2484 = vmatpush3.bf16.msra.mxu0 %v2769_v0  ;;  %2499 = vmatprep.mubr.msk.bf16.mxu0 %vm3218_vm0, %v3217_v1  ;;  %v432_v6 = vmul.f32 1.442695, %v3553_v4  ;;  %v2778_v9 = vld [vmem:[#allocation11 + $0x8] sm:$0xff]   ;;  %v2773_v10 = vld [vmem:[#allocation9 + $0x20] sm:$0xff]   ;;  %v3558_v11 = vshrl.u32 %v434_v8, 7  ;;  %v2779_v12 = vld [vmem:[#allocation11 + $0x10] sm:$0xff]  }
  0xd9   : > { %2485 = vmatprep.subr.bf16.mxu0 %v3217_v1  ;;  %2519 = vmatprep.mubr.msk.bf16.mxu1 %vm3218_vm0, %v3217_v1  ;;  %v2774_v13 = vld [vmem:[#allocation9 + $0x28] sm:$0xff]   ;;  %v2780_v14 = vld [vmem:[#allocation11 + $0x18] sm:$0xff]   ;;  %v2775_v18 = vld [vmem:[#allocation9 + $0x30] sm:$0xff]   ;;  %v466_v30 = vrot.slane %v3553_v4, 2  ;;  %v455_v33 = vsel %vm454_vm1, %v3553_v4, 0.0  ;;  %s2374_s12 = sld [smem:[#allocation2 + $0x2]] }
  0xda   : > { %2929 = vpow2.f32 %v432_v6  ;;  %2504 = vmatpush3.bf16.msra.mxu1 %v2777_v7  ;;  %v3563_v15 = vsub.s32 0, %v3558_v11  ;;  %v3566_v16 = vsub.s32 1, %v3558_v11  ;;  %v429_v17 = vld [vmem:[%s361_s27] sm:$0xff]  ;;  %v2781_v20 = vld [vmem:[#allocation11 + $0x20] sm:$0xff]   ;;  %v2782_v25 = vld [vmem:[#allocation11 + $0x28] sm:$0xff]   ;;  %456 = vadd.xlane.f32.xlu0 %v455_v33  ;;  %v498_v47 = vsub.s32 4, %v3558_v11 }
  0xdb   : > { %2505 = vmatprep.subr.bf16.mxu1 %v3217_v1  ;;  %v2776_v23 = vld [vmem:[#allocation9 + $0x38] sm:$0xff]   ;;  %v2783_v28 = vld [vmem:[#allocation11 + $0x30] sm:$0xff]   ;;  %v2785_v31 = vld [vmem:[#allocation12] ss:$8 sps:$4 sm:$0xff]   ;;  %v468_v35 = vsel %vm454_vm1, %v466_v30, 0.0  ;;  %p424_p0 = scmp.lt.s32.totalorder %s3286_s11, 1 }
  0xdc   : > { %2486 = vmatpush3.bf16.msra.mxu0 %v2770_v2  ;;  %v442_v22 = vrot.slane %v3553_v4, %v3566_v16  ;;  %v2784_v29 = vld [vmem:[#allocation11 + $0x38] sm:$0xff]   ;;  %v2787_v32 = vld [vmem:[#allocation12 + $0x4] ss:$8 sps:$4 sm:$0xff]   ;;  %v2791_v38 = vld [vmem:[#allocation12 + $0x20] ss:$8 sps:$4 sm:$0xff]   ;;  %v499_v48 = vrot.slane %v3553_v4, %v498_v47  ;;  %vm2114_vm2 = vcmask 7168  }
  0xdd   : > { %2487 = vmatprep.subr.bf16.mxu0 %v3217_v1  ;;  %v2790_v34 = vld [vmem:[#allocation12 + $0x14] ss:$8 sps:$4 sm:$0xff]   ;;  %v2788_v36 = vld [vmem:[#allocation12 + $0x10] ss:$8 sps:$4 sm:$0xff]   ;;  %v2793_v37 = vld [vmem:[#allocation12 + $0x24] ss:$8 sps:$4 sm:$0xff]   ;;  %v850_v2 = vstv %s849_s18 }
  0xde   : > { %2506 = vmatpush3.bf16.msra.mxu1 %v2778_v9  ;;  %469 = vadd.xlane.f32.xlu0 %v468_v35  ;;  %v2796_v39 = vld [vmem:[#allocation12 + $0x34] ss:$8 sps:$4 sm:$0xff]   ;;  %v2794_v40 = vld [vmem:[#allocation12 + $0x30] ss:$8 sps:$4 sm:$0xff]   ;;  %v2799_v41 = vld [vmem:[#allocation12 + $0x44] ss:$8 sps:$4 sm:$0xff]  }
  0xdf   : > { %2507 = vmatprep.subr.bf16.mxu1 %v3217_v1  ;;  %v2797_v42 = vld [vmem:[#allocation12 + $0x40] ss:$8 sps:$4 sm:$0xff]   ;;  %v2802_v43 = vld [vmem:[#allocation12 + $0x54] ss:$8 sps:$4 sm:$0xff]   ;;  %v2800_v44 = vld [vmem:[#allocation12 + $0x50] ss:$8 sps:$4 sm:$0xff]  }
  0xe0   : > { %2488 = vmatpush3.bf16.msra.mxu0 %v2771_v3  ;;  %v2805_v45 = vld [vmem:[#allocation12 + $0x64] ss:$8 sps:$4 sm:$0xff]   ;;  %v2803_v46 = vld [vmem:[#allocation12 + $0x60] ss:$8 sps:$4 sm:$0xff]   ;;  %v2808_v56 = vld [vmem:[#allocation12 + $0x74] ss:$8 sps:$4 sm:$0xff]  }
  0xe1   : > { %2489 = vmatprep.subr.bf16.mxu0 %v3217_v1  ;;  %v2806_v57 = vld [vmem:[#allocation12 + $0x70] ss:$8 sps:$4 sm:$0xff]   ;;  %v851_v6 = vmul.f32 1.442695, %v850_v2  ;;  %v2809_v30 = vld [vmem:[#allocation9 + $0x40] sm:$0xff]   ;;  %v2814_v35 = vld [vmem:[#allocation9 + $0x68] sm:$0xff]  }
  0xe2   : > { %2508 = vmatpush3.bf16.msra.mxu1 %v2779_v12  ;;  %v2812_v33 = vld [vmem:[#allocation9 + $0x58] sm:$0xff]   ;;  %s3820_s11 = smov (!%p424_p0, %s3286_s11), 1 }
  0xe3   : > { %2509 = vmatprep.subr.bf16.mxu1 %v3217_v1  ;;  %2931 = vpow2.f32 %v851_v6 }
  0xe4   : > { %2490 = vmatpush3.bf16.msra.mxu0 %v2772_v5  ;;  %v3572_v19 = vpop.eup %2929 }
  0xe5   : > { %2491 = vmatprep.subr.bf16.mxu0 %v3217_v1  ;;  %v437_v21 = vrot.slane %v3572_v19, %v3563_v15 }
  0xe6   : > { %2510 = vmatpush3.bf16.msra.mxu1 %v2780_v14 }
  0xe7   : > { %v438_v24 = vmul.f32 %v437_v21, %v429_v17  ;;  %2511 = vmatprep.subr.bf16.mxu1 %v3217_v1 }
  0xe8   : > { %2492 = vmatpush3.bf16.msra.mxu0 %v2773_v10 }
  0xe9   : > { %2493 = vmatprep.subr.bf16.mxu0 %v3217_v1  ;;  %v3580_v26 = vadd.f32 %v442_v22, %v438_v24 }
  0xea   : > { %2512 = vmatpush3.bf16.msra.mxu1 %v2781_v20  ;;  %v608_v20 = vsub.s32 6, %v3558_v11 }
  0xeb   : > { %2513 = vmatprep.subr.bf16.mxu1 %v3217_v1  ;;  %v479_v27 = vpack.c.bf16 %v3580_v26, %v3580_v26 }
  0xec   : > { %2494 = vmatpush3.bf16.msra.mxu0 %v2774_v13  ;;  %v609_v21 = vrot.slane %v3553_v4, %v608_v20 }
  0xed   : > { %2495 = vmatprep.subr.bf16.mxu0 %v3217_v1  ;;  %v2932_v14 = vpop.eup %2931 }
  0xee   : > { %2514 = vmatpush3.bf16.msra.mxu1 %v2782_v25 }
  0xef   : > { %2515 = vmatprep.subr.bf16.mxu1 %v3217_v1 }
  0xf0   : > { %2496 = vmatpush3.bf16.msra.mxu0 %v2775_v18 }
  0xf1   : > { %2497 = vmatprep.subr.bf16.mxu0 %v3217_v1 }
  0xf2   : > { %2516 = vmatpush3.bf16.msra.mxu1 %v2783_v28 }
  0xf3   : > { %2517 = vmatprep.subr.bf16.mxu1 %v3217_v1 }
  0xf4   : > { %2498 = vmatpush3.bf16.msra.mxu0 %v2776_v23 }
  0xf5   : > { %808 = vmatprep.subr.bf16.mxu0 %v2787_v32  ;;  %v2811_v32 = vld [vmem:[#allocation9 + $0x50] sm:$0xff]  }
  0xf6   : > { %2518 = vmatpush3.bf16.msra.mxu1 %v2784_v29 }
  0xf7   : > { %2500 = vmatmul.mubr.bf16.vlgmr.msra.gmra.mrb[0].mxu0 %v479_v27  ;;  %2523 = vmatprep.subr.bf16.mxu1 %v3217_v1 }
  0xf8   : > { %809 = vmatpush1.bf16.msra.mxu0 %v2785_v31  ;;  %840 = vmatprep.mubr.bf16.mxu0 %v3219_v58  ;;  %v2810_v31 = vld [vmem:[#allocation9 + $0x48] sm:$0xff]  }
  0xf9   : > { %810 = vmatprep.subr.bf16.mxu0 %v2790_v34  ;;  %v2813_v34 = vld [vmem:[#allocation9 + $0x60] sm:$0xff]  }
  0xfc   : > { %811 = vmatpush1.bf16.msra.mxu0 %v2788_v36  ;;  %v2815_v36 = vld [vmem:[#allocation9 + $0x70] sm:$0xff]  }
  0xfd   : > { %812 = vmatprep.subr.bf16.mxu0 %v2793_v37  ;;  %v2816_v37 = vld [vmem:[#allocation9 + $0x78] sm:$0xff]  }
 0x100   : > { %813 = vmatpush1.bf16.msra.mxu0 %v2791_v38  ;;  %v716_v38 = vld [vmem:[%s3784_s7] sm:$0x3] }
 0x101   : > { %814 = vmatprep.subr.bf16.mxu0 %v2796_v39  ;;  %v721_v39 = vrot.slane %v716_v38, %v3563_v15 }
 0x104   : > { %815 = vmatpush1.bf16.msra.mxu0 %v2794_v40 }
 0x105   : > { %816 = vmatprep.subr.bf16.mxu0 %v2799_v41 }
 0x108   : > { %817 = vmatpush1.bf16.msra.mxu0 %v2797_v42 }
 0x109   : > { %818 = vmatprep.subr.bf16.mxu0 %v2802_v43 }
 0x10c   : > { %819 = vmatpush1.bf16.msra.mxu0 %v2800_v44 }
 0x10d   : > { %820 = vmatprep.subr.bf16.mxu0 %v2805_v45 }
 0x110   : > { %821 = vmatpush1.bf16.msra.mxu0 %v2803_v46 }
 0x111   : > { %822 = vmatprep.subr.bf16.mxu0 %v2808_v56  ;;  %v430_v56 = vld [vmem:[%s370_s24] sm:$0xff] }
 0x114   : > { %823 = vmatpush1.bf16.msra.mxu0 %v2806_v57 }
 0x115   : > { %2543 = vmatprep.subr.bf16.mxu0 %v3217_v1 }
 0x167   : > { %v457_v59 = vpop.xlane.xlu0 %456 }
 0x168   : > { %v458_v60 = vrot.slane %v457_v59, 4 }
 0x16a   : > { %v459_v61 = vadd.f32 %v458_v60, %v457_v59  ;;  %v725_v60 = vrot.slane %v716_v38, %v3566_v16 }
 0x16b   : > { %v470_v62 = vpop.xlane.xlu0 %469 }
 0x16c   : > { %v460_v63 = vrot.slane %v459_v61, 2  ;;  %v471_v0 = vrot.slane %v470_v62, 4 }
 0x16e   : > { %v472_v3 = vadd.f32 %v471_v0, %v470_v62  ;;  %v461_v5 = vadd.f32 %v460_v63, %v459_v61 }
 0x170   : > { %v473_v7 = vrot.slane %v472_v3, 2  ;;  %v462_v8 = vrot.slane %v461_v5, 1 }
 0x172   : > { %v463_v9 = vadd.f32 %v462_v8, %v461_v5  ;;  %v474_v10 = vadd.f32 %v473_v7, %v472_v3  ;;  %v2817_v5 = vld [vmem:[#allocation11 + $0x40] sm:$0xff]   ;;  %v2818_v7 = vld [vmem:[#allocation11 + $0x48] sm:$0xff]  }
 0x174   : > { %2643 = vpush %v463_v9  ;;  %v475_v12 = vrot.slane %v474_v10, 1 }
 0x176   : > { %v476_v13 = vadd.f32 %v475_v12, %v474_v10  ;;  %v2819_v12 = vld [vmem:[#allocation11 + $0x50] sm:$0xff]  }
 0x178   : > { %2645 = vpush %v476_v13  ;;  %v2820_v13 = vld [vmem:[#allocation11 + $0x58] sm:$0xff]  }
 0x179   : > { %2647 = vpush %v2932_v14  ;;  %v2821_v14 = vld [vmem:[#allocation11 + $0x60] sm:$0xff]  }
 0x1a5   : > { %s3601_s19 = spop %2643 }
 0x1a9   : > { %s3603_s10 = spop %2645 }
 0x1aa   : > { %s478_s17 = sadd.f32 %s3603_s10, %s3601_s19  ;;  %s3607_s20 = spop %2647 }
 0x1ab   : > { %v854_v17 = vstv %s3607_s20  ;;  %s2408_s10 = sld [smem:[#allocation2 + $0x3]] }
 0x1ac   : > { %2933 = vrcp.f32 %v854_v17 }
 0x1b6   : > { %v2934_v18 = vpop.eup %2933 }
 0x1b7   : > { %2649 = vpush %v2934_v18  ;;  %v2823_v18 = vld [vmem:[#allocation11 + $0x70] sm:$0xff]  }
 0x1ca   : > { %v582_v49 = vpop.f32.mrb[0].mxu0 }
 0x1cb   : > { %v583_v50 = vadd.f32 %v582_v49, %v499_v48  ;;  %v2501_v51 = vpop.f32.mrb[1].mxu0  ;;  %v3627_v48 = vld [vmem:[#allocation8 + $0x8] sm:$0xff] }
 0x1cc   : > { %v585_v52 = vpop.f32.mrb[2].mxu0  ;;  %v1267_v49 = vmul.f32 1.442695, %v3627_v48  ;;  %v446_v51 = vsub.s32 2, %v3558_v11 }
 0x1cd   : > { %v588_v53 = vmax.f32 %v583_v50, 0.0  ;;  %v2502_v54 = vpop.f32.mrb[3].mxu0 }
 0x1ce   : > { %v447_v54 = vrot.slane %v3572_v19, %v446_v51 }
 0x1cf   : > { %v589_v55 = vpack.c.bf16 %v588_v53, %v588_v53 }
 0x1d0   : > { %v448_v57 = vmul.f32 %v447_v54, %v430_v56 }
 0x1d1   : > { %2520 = vmatmul.mubr.bf16.vlgmr.msra.gmra.mrb[0].mxu1 %v589_v55  ;;  %v451_v55 = vsub.s32 3, %v3558_v11 }
 0x1d2   : > { %2539 = vmatprep.mubr.msk.bf16.mxu1 %vm3218_vm0, %v3217_v1  ;;  %2524 = vmatpush3.bf16.msra.mxu1 %v2809_v30  ;;  %v2834_v30 = vld [vmem:[#allocation12 + $0xb0] ss:$8 sps:$4 sm:$0xff]  }
 0x1d3   : > { %2525 = vmatprep.subr.bf16.mxu1 %v3217_v1  ;;  %v452_v59 = vrot.slane %v3553_v4, %v451_v55  ;;  %v1287_v6 = vrot.slane %v3627_v48, %v451_v55 }
 0x1d5   : > { %v453_v61 = vadd.f32 %v452_v59, %v448_v57  ;;  %v999_v59 = vsub.s32 7, %v3558_v11 }
 0x1d6   : > { %2526 = vmatpush3.bf16.msra.mxu1 %v2810_v31  ;;  %v2839_v31 = vld [vmem:[#allocation12 + $0xc4] ss:$8 sps:$4 sm:$0xff]  }
 0x1d7   : > { %2527 = vmatprep.subr.bf16.mxu1 %v3217_v1 }
 0x1da   : > { %2528 = vmatpush3.bf16.msra.mxu1 %v2811_v32  ;;  %v2837_v32 = vld [vmem:[#allocation12 + $0xc0] ss:$8 sps:$4 sm:$0xff]  }
 0x1db   : > { %2529 = vmatprep.subr.bf16.mxu1 %v3217_v1 }
 0x1de   : > { %2530 = vmatpush3.bf16.msra.mxu1 %v2812_v33  ;;  %v2842_v33 = vld [vmem:[#allocation12 + $0xd4] ss:$8 sps:$4 sm:$0xff]  }
 0x1df   : > { %2531 = vmatprep.subr.bf16.mxu1 %v3217_v1 }
 0x1e2   : > { %2532 = vmatpush3.bf16.msra.mxu1 %v2813_v34  ;;  %v2840_v34 = vld [vmem:[#allocation12 + $0xd0] ss:$8 sps:$4 sm:$0xff]  }
 0x1e3   : > { %2533 = vmatprep.subr.bf16.mxu1 %v3217_v1 }
 0x1e6   : > { %2534 = vmatpush3.bf16.msra.mxu1 %v2814_v35  ;;  %v2845_v35 = vld [vmem:[#allocation12 + $0xe4] ss:$8 sps:$4 sm:$0xff]  }
 0x1e7   : > { %2535 = vmatprep.subr.bf16.mxu1 %v3217_v1 }
 0x1e8   : > { %s2650_s3 = spop %2649 }
 0x1e9   : > { %v857_v41 = vstv %s2650_s3  ;;  %s2274_s3 = sshll.u32 %s3820_s11, 3 }
 0x1ea   : > { %2536 = vmatpush3.bf16.msra.mxu1 %v2815_v36  ;;  %v2843_v36 = vld [vmem:[#allocation12 + $0xe0] ss:$8 sps:$4 sm:$0xff]   ;;  %s427_s14 = scalar_lea.vmem %s3785_s8, %s2274_s3 }
 0x1eb   : > { %2537 = vmatprep.subr.bf16.mxu1 %v3217_v1 }
 0x1ee   : > { %2538 = vmatpush3.bf16.msra.mxu1 %v2816_v37  ;;  %v888_v37 = vsub.s32 5, %v3558_v11 }
 0x1f0   : > { %v889_v38 = vrot.slane %v3553_v4, %v888_v37 }
 0x2a4   : > { %v692_v22 = vpop.f32.mrb[0].mxu1 }
 0x2a5   : > { %v693_v23 = vadd.f32 %v692_v22, %v609_v21  ;;  %v2521_v24 = vpop.f32.mrb[1].mxu1  ;;  %v2824_v21 = vld [vmem:[#allocation11 + $0x78] sm:$0xff]   ;;  %v2825_v22 = vld [vmem:[#allocation12 + $0x80] ss:$8 sps:$4 sm:$0xff]  }
 0x2a6   : > { %v695_v25 = vpop.f32.mrb[2].mxu1  ;;  %v2830_v24 = vld [vmem:[#allocation12 + $0x94] ss:$8 sps:$4 sm:$0xff]  }
 0x2a7   : > { %v698_v27 = vmax.f32 %v693_v23, 0.0  ;;  %v2522_v28 = vpop.f32.mrb[3].mxu1  ;;  %v2827_v23 = vld [vmem:[#allocation12 + $0x84] ss:$8 sps:$4 sm:$0xff]   ;;  %v2828_v25 = vld [vmem:[#allocation12 + $0x90] ss:$8 sps:$4 sm:$0xff]  }
 0x2a8   : > { %1201 = vmatprep.subr.bf16.mxu1 %v2827_v23  ;;  %v2831_v28 = vld [vmem:[#allocation12 + $0xa0] ss:$8 sps:$4 sm:$0xff]  }
 0x2a9   : > { %v699_v29 = vpack.c.bf16 %v698_v27, %v698_v27  ;;  %v2833_v27 = vld [vmem:[#allocation12 + $0xa4] ss:$8 sps:$4 sm:$0xff]  }
 0x2ab   : > { %841 = vmatmul.mubr.bf16.vlgmr.msra.gmra.mrb[4].mxu0 %v699_v29  ;;  %v2836_v29 = vld [vmem:[#allocation12 + $0xb4] ss:$8 sps:$4 sm:$0xff]  }
 0x2ac   : > { %2559 = vmatprep.mubr.msk.bf16.mxu0 %vm3218_vm0, %v3217_v1  ;;  %2544 = vmatpush3.bf16.msra.mxu0 %v2817_v5 }
 0x2ad   : > { %2545 = vmatprep.subr.bf16.mxu0 %v3217_v1 }
 0x2b0   : > { %2546 = vmatpush3.bf16.msra.mxu0 %v2818_v7  ;;  %v2850_v7 = vld [vmem:[#allocation9 + $0x88] sm:$0xff]  }
 0x2b1   : > { %2547 = vmatprep.subr.bf16.mxu0 %v3217_v1 }
 0x2b4   : > { %2548 = vmatpush3.bf16.msra.mxu0 %v2819_v12  ;;  %v2854_v12 = vld [vmem:[#allocation9 + $0xa8] sm:$0xff]  }
 0x2b5   : > { %2549 = vmatprep.subr.bf16.mxu0 %v3217_v1 }
 0x2b8   : > { %2550 = vmatpush3.bf16.msra.mxu0 %v2820_v13  ;;  %v2855_v13 = vld [vmem:[#allocation9 + $0xb0] sm:$0xff]  }
 0x2b9   : > { %2551 = vmatprep.subr.bf16.mxu0 %v3217_v1 }
 0x2bc   : > { %2552 = vmatpush3.bf16.msra.mxu0 %v2821_v14  ;;  %v2856_v14 = vld [vmem:[#allocation9 + $0xb8] sm:$0xff]  }
 0x2bd   : > { %2553 = vmatprep.subr.bf16.mxu0 %v3217_v1 }
 0x37e   : > { %v842_v40 = vpop.f32.mrb[4].mxu0 }
 0x37f   : > { %v843_v42 = vadd.f32 %v842_v40, %v721_v39  ;;  %v844_v43 = vpop.f32.mrb[5].mxu0 }
 0x380   : > { %v846_v44 = vpop.f32.mrb[6].mxu0  ;;  %v845_v0 = vadd.f32 %v844_v43, %v725_v60  ;;  %v1000_v60 = vrot.slane %v3553_v4, %v999_v59  ;;  %v2852_v4 = vld [vmem:[#allocation9 + $0x98] sm:$0xff]  }
 0x381   : > { %v858_v45 = vmul.f32 %v857_v41, %v843_v42  ;;  %v847_v46 = vpop.f32.mrb[7].mxu0 }
 0x382   : > { %v2848_v46 = vld [vmem:[#allocation12 + $0xf4] ss:$8 sps:$4 sm:$0xff]  }
 0x383   : > { %2935 = vtanh.f32 %v858_v45 }
 0x384   : > { %2937 = vpow2.f32 %v1267_v49  ;;  %v2846_v49 = vld [vmem:[#allocation12 + $0xf0] ss:$8 sps:$4 sm:$0xff]  }
 0x38d   : > { %v2936_v50 = vpop.eup %2935 }
 0x38e   : > { %v861_v52 = vmul.f32 %v2936_v50, %v854_v17  ;;  %v3637_v62 = vpop.eup %2937  ;;  %v2822_v17 = vld [vmem:[#allocation11 + $0x68] sm:$0xff]   ;;  %v1289_v50 = vsel %vm454_vm1, %v3627_v48, 0.0 }
 0x38f   : > { %v1282_v3 = vrot.slane %v3637_v62, %v446_v51  ;;  %2554 = vmatpush3.bf16.msra.mxu0 %v2822_v17  ;;  %v1300_v51 = vrot.slane %v3627_v48, 2  ;;  %1290 = vadd.xlane.f32.xlu1 %v1289_v50 }
 0x390   : > { %866 = vadd.xlane.f32.xlu0 %v861_v52  ;;  %v862_v53 = vmul.f32 1.442695, %v861_v52  ;;  %2555 = vmatprep.subr.bf16.mxu0 %v3217_v1 }
 0x391   : > { %v1302_v52 = vsel %vm454_vm1, %v1300_v51, 0.0 }
 0x392   : > { %2939 = vpow2.f32 %v862_v53  ;;  %v1243_v53 = vstv %s2340_s30 }
 0x393   : > { %2556 = vmatpush3.bf16.msra.mxu0 %v2823_v18  ;;  %1303 = vadd.xlane.f32.xlu1 %v1302_v52  ;;  %v1244_v54 = vmul.f32 1.442695, %v1243_v53  ;;  %v1272_v53 = vrot.slane %v3637_v62, %v3563_v15  ;;  %v2860_v62 = vld [vmem:[#allocation11 + $0x98] sm:$0xff]  }
 0x394   : > { %2557 = vmatprep.subr.bf16.mxu0 %v3217_v1 }
 0x395   : > { %2941 = vpow2.f32 %v1244_v54  ;;  %v2857_v54 = vld [vmem:[#allocation11 + $0x80] sm:$0xff]  }
 0x397   : > { %2558 = vmatpush3.bf16.msra.mxu0 %v2824_v21 }
 0x398   : > { %2563 = vmatprep.subr.bf16.mxu0 %v3217_v1 }
 0x39c   : > { %v2940_v63 = vpop.eup %2939 }
 0x39d   : > { %v864_v2 = vmul.f32 %v2940_v63, %v453_v61 }
 0x39f   : > { %v865_v19 = vadd.f32 %v864_v2, %v845_v0  ;;  %v2942_v55 = vpop.eup %2941 }
 0x3a0   : > { %2651 = vpush %v2942_v55 }
 0x3a1   : > { %v868_v8 = vpack.c.bf16 %v865_v19, %v865_v19  ;;  %v1283_v9 = vmul.f32 %v1282_v3, %v865_v19 }
 0x3a3   : > { %2540 = vmatmul.mubr.bf16.vlgmr.msra.gmra.mrb[4].mxu1 %v868_v8  ;;  %v3642_v10 = vadd.f32 %v1287_v6, %v1283_v9  ;;  %v2849_v6 = vld [vmem:[#allocation9 + $0x80] sm:$0xff]   ;;  %v2851_v8 = vld [vmem:[#allocation9 + $0x90] sm:$0xff]  }
 0x3a4   : > { %1233 = vmatprep.mubr.bf16.mxu1 %v3219_v58  ;;  %1202 = vmatpush1.bf16.msra.mxu1 %v2825_v22  ;;  %v2853_v9 = vld [vmem:[#allocation9 + $0xa0] sm:$0xff]  }
 0x3a5   : > { %1203 = vmatprep.subr.bf16.mxu1 %v2830_v24 }
 0x3a8   : > { %1204 = vmatpush1.bf16.msra.mxu1 %v2828_v25 }
 0x3a9   : > { %1205 = vmatprep.subr.bf16.mxu1 %v2833_v27 }
 0x3ac   : > { %1206 = vmatpush1.bf16.msra.mxu1 %v2831_v28 }
 0x3ad   : > { %1207 = vmatprep.subr.bf16.mxu1 %v2836_v29 }
 0x3b0   : > { %1208 = vmatpush1.bf16.msra.mxu1 %v2834_v30 }
 0x3b1   : > { %1209 = vmatprep.subr.bf16.mxu1 %v2839_v31 }
 0x3b4   : > { %1210 = vmatpush1.bf16.msra.mxu1 %v2837_v32 }
 0x3b5   : > { %1211 = vmatprep.subr.bf16.mxu1 %v2842_v33 }
 0x3b8   : > { %1212 = vmatpush1.bf16.msra.mxu1 %v2840_v34  ;;  %v2323_v34 = vld [vmem:[%s3784_s7 + $0x2] sm:$0x3] }
 0x3b9   : > { %1213 = vmatprep.subr.bf16.mxu1 %v2845_v35  ;;  %v1114_v35 = vrot.slane %v2323_v34, %v3563_v15 }
 0x3bc   : > { %1214 = vmatpush1.bf16.msra.mxu1 %v2843_v36 }
 0x3bd   : > { %1215 = vmatprep.subr.bf16.mxu1 %v2848_v46 }
 0x3c0   : > { %1216 = vmatpush1.bf16.msra.mxu1 %v2846_v49  ;;  %v1118_v49 = vrot.slane %v2323_v34, %v3566_v16 }
 0x3c1   : > { %2583 = vmatprep.subr.bf16.mxu1 %v3217_v1 }
 0x3d1   : > { %s3663_s22 = spop %2651 }
 0x3d2   : > { %v1247_v56 = vstv %s3663_s22 }
 0x3d3   : > { %2943 = vrcp.f32 %v1247_v56 }
 0x3dd   : > { %v2944_v57 = vpop.eup %2943 }
 0x3de   : > { %2653 = vpush %v2944_v57  ;;  %v1277_v57 = vrot.slane %v3627_v48, %v3566_v16 }
 0x40f   : > { %s2654_s21 = spop %2653 }
 0x41c   : > { %v1291_v17 = vpop.xlane.xlu1 %1290 }
 0x41d   : > { %v1292_v18 = vrot.slane %v1291_v17, 4 }
 0x41f   : > { %v1293_v21 = vadd.f32 %v1292_v18, %v1291_v17  ;;  %v2877_v17 = vld [vmem:[#allocation12 + $0x140] ss:$8 sps:$4 sm:$0xff]   ;;  %v2882_v18 = vld [vmem:[#allocation12 + $0x154] ss:$8 sps:$4 sm:$0xff]  }
 0x420   : > { %v1304_v22 = vpop.xlane.xlu1 %1303 }
 0x421   : > { %v1294_v23 = vrot.slane %v1293_v21, 2  ;;  %v1305_v24 = vrot.slane %v1304_v22, 4 }
 0x423   : > { %v1306_v25 = vadd.f32 %v1305_v24, %v1304_v22  ;;  %v1295_v27 = vadd.f32 %v1294_v23, %v1293_v21  ;;  %v2880_v21 = vld [vmem:[#allocation12 + $0x150] ss:$8 sps:$4 sm:$0xff]   ;;  %v2885_v22 = vld [vmem:[#allocation12 + $0x164] ss:$8 sps:$4 sm:$0xff]   ;;  %v2883_v23 = vld [vmem:[#allocation12 + $0x160] ss:$8 sps:$4 sm:$0xff]   ;;  %v867_v24 = vpop.xlane.xlu0 %866 }
 0x425   : > { %v1307_v28 = vrot.slane %v1306_v25, 2  ;;  %v1296_v29 = vrot.slane %v1295_v27, 1 }
 0x427   : > { %v1297_v30 = vadd.f32 %v1296_v29, %v1295_v27  ;;  %v1308_v31 = vadd.f32 %v1307_v28, %v1306_v25  ;;  %v1261_v25 = vstv %s478_s17 }
 0x428   : > { %v1263_v27 = vadd.f32 %v1261_v25, %v867_v24 }
 0x429   : > { %2655 = vpush %v1297_v30  ;;  %v1309_v32 = vrot.slane %v1308_v31, 1 }
 0x42b   : > { %v1310_v33 = vadd.f32 %v1309_v32, %v1308_v31  ;;  %v1334_v32 = vrot.slane %v3627_v48, %v498_v47 }
 0x42d   : > { %2657 = vpush %v1310_v33 }
 0x45a   : > { %s2656_s13 = spop %2655 }
 0x45e   : > { %s2658_s0 = spop %2657 }
 0x45f   : > { %s1312_s27 = sadd.f32 %s2658_s0, %s2656_s13 }
 0x461   : > { %v2099_v28 = vstv %s1312_s27 }
 0x476   : > { %v972_v39 = vpop.f32.mrb[4].mxu1 }
 0x477   : > { %v973_v40 = vadd.f32 %v972_v39, %v889_v38  ;;  %v2541_v41 = vpop.f32.mrb[5].mxu1  ;;  %v1250_v38 = vstv %s2654_s21 }
 0x478   : > { %v975_v42 = vpop.f32.mrb[6].mxu1 }
 0x479   : > { %v978_v43 = vmax.f32 %v973_v40, 0.0  ;;  %v2542_v44 = vpop.f32.mrb[7].mxu1 }
 0x47b   : > { %v979_v45 = vpack.c.bf16 %v978_v43, %v978_v43 }
 0x47d   : > { %2560 = vmatmul.mubr.bf16.vlgmr.msra.gmra.mrb[8].mxu0 %v979_v45 }
 0x47e   : > { %2579 = vmatprep.mubr.msk.bf16.mxu0 %vm3218_vm0, %v3217_v1  ;;  %2564 = vmatpush3.bf16.msra.mxu0 %v2849_v6  ;;  %v2867_v6 = vld [vmem:[#allocation12 + $0x104] ss:$8 sps:$4 sm:$0xff]  }
 0x47f   : > { %2565 = vmatprep.subr.bf16.mxu0 %v3217_v1 }
 0x482   : > { %2566 = vmatpush3.bf16.msra.mxu0 %v2850_v7  ;;  %v2870_v7 = vld [vmem:[#allocation12 + $0x114] ss:$8 sps:$4 sm:$0xff]  }
 0x483   : > { %2567 = vmatprep.subr.bf16.mxu0 %v3217_v1 }
 0x486   : > { %2568 = vmatpush3.bf16.msra.mxu0 %v2851_v8  ;;  %v2868_v8 = vld [vmem:[#allocation12 + $0x110] ss:$8 sps:$4 sm:$0xff]  }
 0x487   : > { %2569 = vmatprep.subr.bf16.mxu0 %v3217_v1 }
 0x48a   : > { %2570 = vmatpush3.bf16.msra.mxu0 %v2852_v4  ;;  %v2873_v4 = vld [vmem:[#allocation12 + $0x124] ss:$8 sps:$4 sm:$0xff]  }
 0x48b   : > { %2571 = vmatprep.subr.bf16.mxu0 %v3217_v1 }
 0x48e   : > { %2572 = vmatpush3.bf16.msra.mxu0 %v2853_v9  ;;  %v2871_v9 = vld [vmem:[#allocation12 + $0x120] ss:$8 sps:$4 sm:$0xff]  }
 0x48f   : > { %2573 = vmatprep.subr.bf16.mxu0 %v3217_v1 }
 0x492   : > { %2574 = vmatpush3.bf16.msra.mxu0 %v2854_v12  ;;  %v2876_v12 = vld [vmem:[#allocation12 + $0x134] ss:$8 sps:$4 sm:$0xff]  }
 0x493   : > { %2575 = vmatprep.subr.bf16.mxu0 %v3217_v1 }
 0x496   : > { %2576 = vmatpush3.bf16.msra.mxu0 %v2855_v13  ;;  %v2874_v13 = vld [vmem:[#allocation12 + $0x130] ss:$8 sps:$4 sm:$0xff]  }
 0x497   : > { %2577 = vmatprep.subr.bf16.mxu0 %v3217_v1 }
 0x49a   : > { %2578 = vmatpush3.bf16.msra.mxu0 %v2856_v14  ;;  %v2879_v14 = vld [vmem:[#allocation12 + $0x144] ss:$8 sps:$4 sm:$0xff]  }
 0x49b   : > { %1646 = vmatprep.subr.bf16.mxu0 %v2867_v6 }
 0x550   : > { %v1083_v61 = vpop.f32.mrb[8].mxu0 }
 0x551   : > { %v1084_v63 = vadd.f32 %v1083_v61, %v1000_v60  ;;  %v2561_v0 = vpop.f32.mrb[9].mxu0  ;;  %v2858_v60 = vld [vmem:[#allocation11 + $0x88] sm:$0xff]  }
 0x552   : > { %v1086_v2 = vpop.f32.mrb[10].mxu0  ;;  %v2861_v0 = vld [vmem:[#allocation11 + $0xa0] sm:$0xff]  }
 0x553   : > { %v1089_v3 = vmax.f32 %v1084_v63, 0.0  ;;  %v2562_v5 = vpop.f32.mrb[11].mxu0  ;;  %v2859_v63 = vld [vmem:[#allocation11 + $0x90] sm:$0xff]   ;;  %v2862_v2 = vld [vmem:[#allocation11 + $0xa8] sm:$0xff]  }
 0x554   : > { %v2864_v5 = vld [vmem:[#allocation11 + $0xb8] sm:$0xff]  }
 0x555   : > { %v1090_v19 = vpack.c.bf16 %v1089_v3, %v1089_v3  ;;  %v2863_v3 = vld [vmem:[#allocation11 + $0xb0] sm:$0xff]  }
 0x557   : > { %1234 = vmatmul.mubr.bf16.vlgmr.msra.gmra.mrb[8].mxu1 %v1090_v19  ;;  %v2865_v19 = vld [vmem:[#allocation12 + $0x100] ss:$8 sps:$4 sm:$0xff]  }
 0x558   : > { %2599 = vmatprep.mubr.msk.bf16.mxu1 %vm3218_vm0, %v3217_v1  ;;  %2584 = vmatpush3.bf16.msra.mxu1 %v2857_v54 }
 0x559   : > { %2585 = vmatprep.subr.bf16.mxu1 %v3217_v1 }
 0x55c   : > { %2586 = vmatpush3.bf16.msra.mxu1 %v2858_v60  ;;  %v2889_v60 = vld [vmem:[#allocation9 + $0xc0] sm:$0xff]  }
 0x55d   : > { %2587 = vmatprep.subr.bf16.mxu1 %v3217_v1 }
 0x560   : > { %2588 = vmatpush3.bf16.msra.mxu1 %v2859_v63  ;;  %v2891_v63 = vld [vmem:[#allocation9 + $0xd0] sm:$0xff]  }
 0x561   : > { %2589 = vmatprep.subr.bf16.mxu1 %v3217_v1 }
 0x564   : > { %2590 = vmatpush3.bf16.msra.mxu1 %v2860_v62  ;;  %v2894_v62 = vld [vmem:[#allocation9 + $0xe8] sm:$0xff]  }
 0x565   : > { %2591 = vmatprep.subr.bf16.mxu1 %v3217_v1 }
 0x568   : > { %2592 = vmatpush3.bf16.msra.mxu1 %v2861_v0  ;;  %v2895_v0 = vld [vmem:[#allocation9 + $0xf0] sm:$0xff]  }
 0x569   : > { %2593 = vmatprep.subr.bf16.mxu1 %v3217_v1 }
 0x56c   : > { %2594 = vmatpush3.bf16.msra.mxu1 %v2862_v2  ;;  %v2896_v2 = vld [vmem:[#allocation9 + $0xf8] sm:$0xff]  }
 0x56d   : > { %2595 = vmatprep.subr.bf16.mxu1 %v3217_v1 }
 0x570   : > { %2596 = vmatpush3.bf16.msra.mxu1 %v2863_v3  ;;  %v2357_v3 = vld [vmem:[%s3784_s7 + $0x4] sm:$0x3] }
 0x571   : > { %2597 = vmatprep.subr.bf16.mxu1 %v3217_v1 }
 0x574   : > { %2598 = vmatpush3.bf16.msra.mxu1 %v2864_v5  ;;  %v1559_v5 = vrot.slane %v2357_v3, %v3563_v15 }
 0x575   : > { %2603 = vmatprep.subr.bf16.mxu1 %v3217_v1 }
 0x62a   : > { %v1235_v36 = vpop.f32.mrb[8].mxu1 }
 0x62b   : > { %v1236_v39 = vadd.f32 %v1235_v36, %v1114_v35  ;;  %v1237_v40 = vpop.f32.mrb[9].mxu1 }
 0x62c   : > { %v1239_v41 = vpop.f32.mrb[10].mxu1  ;;  %v1238_v51 = vadd.f32 %v1237_v40, %v1118_v49  ;;  %v1445_v49 = vrot.slane %v3627_v48, %v608_v20  ;;  %v2892_v20 = vld [vmem:[#allocation9 + $0xd8] sm:$0xff]  }
 0x62d   : > { %v1251_v42 = vmul.f32 %v1250_v38, %v1236_v39  ;;  %v1240_v43 = vpop.f32.mrb[11].mxu1  ;;  %v2888_v41 = vld [vmem:[#allocation12 + $0x174] ss:$8 sps:$4 sm:$0xff]  }
 0x62e   : > { %v1688_v43 = vstv %s2374_s12 }
 0x62f   : > { %2945 = vtanh.f32 %v1251_v42  ;;  %v2886_v42 = vld [vmem:[#allocation12 + $0x170] ss:$8 sps:$4 sm:$0xff]   ;;  %v1689_v47 = vmul.f32 1.442695, %v1688_v43 }
 0x630   : > { %v2914_v43 = vld [vmem:[#allocation12 + $0x1b0] ss:$8 sps:$4 sm:$0xff]  }
 0x639   : > { %v2946_v44 = vpop.eup %2945 }
 0x63a   : > { %v1254_v45 = vmul.f32 %v2946_v44, %v1247_v56 }
 0x63c   : > { %1259 = vadd.xlane.f32.xlu1 %v1254_v45  ;;  %v1255_v46 = vmul.f32 1.442695, %v1254_v45 }
 0x63e   : > { %2947 = vpow2.f32 %v1255_v46 }
 0x63f   : > { %2949 = vpow2.f32 %v1689_v47  ;;  %v2919_v47 = vld [vmem:[#allocation12 + $0x1c4] ss:$8 sps:$4 sm:$0xff]  }
 0x648   : > { %v2948_v50 = vpop.eup %2947 }
 0x649   : > { %v1257_v52 = vmul.f32 %v2948_v50, %v3580_v26  ;;  %v2950_v44 = vpop.eup %2949 }
 0x64a   : > { %2659 = vpush %v2950_v44  ;;  %v2922_v44 = vld [vmem:[#allocation12 + $0x1d4] ss:$8 sps:$4 sm:$0xff]  }
 0x64b   : > { %v1258_v55 = vadd.f32 %v1257_v52, %v1238_v51 }
 0x64d   : > { %v1273_v56 = vmul.f32 %v1272_v53, %v1258_v55 }
 0x64f   : > { %v3694_v61 = vadd.f32 %v1277_v57, %v1273_v56  ;;  %v2890_v56 = vld [vmem:[#allocation9 + $0xc8] sm:$0xff]  }
 0x651   : > { %v1313_v26 = vpack.c.bf16 %v3694_v61, %v3694_v61 }
 0x653   : > { %2580 = vmatmul.mubr.bf16.vlgmr.msra.gmra.mrb[12].mxu0 %v1313_v26  ;;  %v2893_v26 = vld [vmem:[#allocation9 + $0xe0] sm:$0xff]  }
 0x654   : > { %1678 = vmatprep.mubr.bf16.mxu0 %v3219_v58  ;;  %1647 = vmatpush1.bf16.msra.mxu0 %v2865_v19 }
 0x655   : > { %1648 = vmatprep.subr.bf16.mxu0 %v2870_v7 }
 0x658   : > { %1649 = vmatpush1.bf16.msra.mxu0 %v2868_v8 }
 0x659   : > { %1650 = vmatprep.subr.bf16.mxu0 %v2873_v4 }
 0x65c   : > { %1651 = vmatpush1.bf16.msra.mxu0 %v2871_v9 }
 0x65d   : > { %1652 = vmatprep.subr.bf16.mxu0 %v2876_v12 }
 0x660   : > { %1653 = vmatpush1.bf16.msra.mxu0 %v2874_v13 }
 0x661   : > { %1654 = vmatprep.subr.bf16.mxu0 %v2879_v14 }
 0x664   : > { %1655 = vmatpush1.bf16.msra.mxu0 %v2877_v17 }
 0x665   : > { %1656 = vmatprep.subr.bf16.mxu0 %v2882_v18  ;;  %v1563_v18 = vrot.slane %v2357_v3, %v3566_v16 }
 0x668   : > { %1657 = vmatpush1.bf16.msra.mxu0 %v2880_v21 }
 0x669   : > { %1658 = vmatprep.subr.bf16.mxu0 %v2885_v22 }
 0x66c   : > { %1659 = vmatpush1.bf16.msra.mxu0 %v2883_v23 }
 0x66d   : > { %1660 = vmatprep.subr.bf16.mxu0 %v2888_v41  ;;  %v2911_v41 = vld [vmem:[#allocation12 + $0x1a0] ss:$8 sps:$4 sm:$0xff]  }
 0x670   : > { %1661 = vmatpush1.bf16.msra.mxu0 %v2886_v42  ;;  %v2916_v42 = vld [vmem:[#allocation12 + $0x1b4] ss:$8 sps:$4 sm:$0xff]  }
 0x671   : > { %2623 = vmatprep.subr.bf16.mxu0 %v3217_v1 }
 0x67b   : > { %s3717_s9 = spop %2659 }
 0x67c   : > { %v1692_v45 = vstv %s3717_s9 }
 0x67d   : > { %2951 = vrcp.f32 %v1692_v45 }
 0x687   : > { %v2952_v46 = vpop.eup %2951 }
 0x688   : > { %2661 = vpush %v2952_v46  ;;  %v2925_v46 = vld [vmem:[#allocation12 + $0x1e4] ss:$8 sps:$4 sm:$0xff]  }
 0x6b9   : > { %s2662_s19 = spop %2661 }
 0x6ba   : > { %v1695_v6 = vstv %s2662_s19 }
 0x6c9   : > { %v1260_v29 = vpop.xlane.xlu1 %1259 }
 0x6ca   : > { %v1264_v30 = vadd.f32 %v1263_v27, %v1260_v29  ;;  %v2898_v29 = vld [vmem:[#allocation11 + $0xc8] sm:$0xff]  }
 0x6cc   : > { %v3709_v31 = vadd.f32 %v2099_v28, %v1264_v30  ;;  %v2897_v28 = vld [vmem:[#allocation11 + $0xc0] sm:$0xff]   ;;  %v2899_v30 = vld [vmem:[#allocation11 + $0xd0] sm:$0xff]  }
 0x726   : > { %v1417_v33 = vpop.f32.mrb[12].mxu0 }
 0x727   : > { %v1418_v34 = vadd.f32 %v1417_v33, %v1334_v32  ;;  %v2581_v35 = vpop.f32.mrb[13].mxu0  ;;  %v2900_v32 = vld [vmem:[#allocation11 + $0xd8] sm:$0xff]   ;;  %v2902_v33 = vld [vmem:[#allocation11 + $0xe8] sm:$0xff]  }
 0x728   : > { %v1420_v36 = vpop.f32.mrb[14].mxu0  ;;  %v2905_v35 = vld [vmem:[#allocation12 + $0x180] ss:$8 sps:$4 sm:$0xff]  }
 0x729   : > { %v1423_v38 = vmax.f32 %v1418_v34, 0.0  ;;  %v2582_v39 = vpop.f32.mrb[15].mxu0  ;;  %v2904_v34 = vld [vmem:[#allocation11 + $0xf8] sm:$0xff]   ;;  %v2907_v36 = vld [vmem:[#allocation12 + $0x184] ss:$8 sps:$4 sm:$0xff]  }
 0x72a   : > { %v2908_v39 = vld [vmem:[#allocation12 + $0x190] ss:$8 sps:$4 sm:$0xff]  }
 0x72b   : > { %v1424_v40 = vpack.c.bf16 %v1423_v38, %v1423_v38  ;;  %v2910_v38 = vld [vmem:[#allocation12 + $0x194] ss:$8 sps:$4 sm:$0xff]  }
 0x72d   : > { %2600 = vmatmul.mubr.bf16.vlgmr.msra.gmra.mrb[12].mxu1 %v1424_v40  ;;  %v2913_v40 = vld [vmem:[#allocation12 + $0x1a4] ss:$8 sps:$4 sm:$0xff]  }
 0x72e   : > { %2619 = vmatprep.mubr.msk.bf16.mxu1 %vm3218_vm0, %v3217_v1  ;;  %2604 = vmatpush3.bf16.msra.mxu1 %v2889_v60 }
 0x72f   : > { %2605 = vmatprep.subr.bf16.mxu1 %v3217_v1 }
 0x732   : > { %2606 = vmatpush3.bf16.msra.mxu1 %v2890_v56  ;;  %v2928_v56 = vld [vmem:[#allocation12 + $0x1f4] ss:$8 sps:$4 sm:$0xff]  }
 0x733   : > { %2607 = vmatprep.subr.bf16.mxu1 %v3217_v1 }
 0x736   : > { %2608 = vmatpush3.bf16.msra.mxu1 %v2891_v63  ;;  %v2926_v63 = vld [vmem:[#allocation12 + $0x1f0] ss:$8 sps:$4 sm:$0xff]  }
 0x737   : > { %2609 = vmatprep.subr.bf16.mxu1 %v3217_v1 }
 0x73a   : > { %2610 = vmatpush3.bf16.msra.mxu1 %v2892_v20  ;;  %v2081_v20 = vstv %s2408_s10 }
 0x73b   : > { %2611 = vmatprep.subr.bf16.mxu1 %v3217_v1 }
 0x73e   : > { %2612 = vmatpush3.bf16.msra.mxu1 %v2893_v26  ;;  %v2082_v26 = vmul.f32 1.442695, %v2081_v20 }
 0x73f   : > { %2613 = vmatprep.subr.bf16.mxu1 %v3217_v1 }
 0x742   : > { %2614 = vmatpush3.bf16.msra.mxu1 %v2894_v62 }
 0x743   : > { %2615 = vmatprep.subr.bf16.mxu1 %v3217_v1 }
 0x746   : > { %2616 = vmatpush3.bf16.msra.mxu1 %v2895_v0 }
 0x747   : > { %2617 = vmatprep.subr.bf16.mxu1 %v3217_v1 }
 0x74a   : > { %2618 = vmatpush3.bf16.msra.mxu1 %v2896_v2  ;;  %v1838_v2 = vrot.slane %v3627_v48, %v999_v59 }
 0x74b   : > { %2039 = vmatprep.subr.bf16.mxu1 %v2907_v36 }
 0x800   : > { %v1528_v50 = vpop.f32.mrb[12].mxu1 }
 0x801   : > { %v1529_v51 = vadd.f32 %v1528_v50, %v1445_v49  ;;  %v2601_v52 = vpop.f32.mrb[13].mxu1  ;;  %v2923_v49 = vld [vmem:[#allocation12 + $0x1e0] ss:$8 sps:$4 sm:$0xff]   ;;  %v1727_v50 = vrot.slane %v3627_v48, %v888_v37 }
 0x802   : > { %v1531_v53 = vpop.f32.mrb[14].mxu1 }
 0x803   : > { %v1534_v54 = vmax.f32 %v1529_v51, 0.0  ;;  %v2602_v55 = vpop.f32.mrb[15].mxu1 }
 0x805   : > { %v1535_v57 = vpack.c.bf16 %v1534_v54, %v1534_v54 }
 0x807   : > { %1679 = vmatmul.mubr.bf16.vlgmr.msra.gmra.mrb[16].mxu0 %v1535_v57 }
 0x808   : > { %2639 = vmatprep.mubr.msk.bf16.mxu0 %vm3218_vm0, %v3217_v1  ;;  %2624 = vmatpush3.bf16.msra.mxu0 %v2897_v28 }
 0x809   : > { %2625 = vmatprep.subr.bf16.mxu0 %v3217_v1 }
 0x80c   : > { %2626 = vmatpush3.bf16.msra.mxu0 %v2898_v29 }
 0x80d   : > { %2627 = vmatprep.subr.bf16.mxu0 %v3217_v1 }
 0x810   : > { %2628 = vmatpush3.bf16.msra.mxu0 %v2899_v30 }
 0x811   : > { %2629 = vmatprep.subr.bf16.mxu0 %v3217_v1 }
 0x814   : > { %2630 = vmatpush3.bf16.msra.mxu0 %v2900_v32 }
 0x815   : > { %2631 = vmatprep.subr.bf16.mxu0 %v3217_v1 }
 0x8da   : > { %v1680_v19 = vpop.f32.mrb[16].mxu0 }
 0x8db   : > { %v1681_v7 = vadd.f32 %v1680_v19, %v1559_v5  ;;  %v1682_v8 = vpop.f32.mrb[17].mxu0 }
 0x8dc   : > { %v1684_v4 = vpop.f32.mrb[18].mxu0  ;;  %v1683_v22 = vadd.f32 %v1682_v8, %v1563_v18 }
 0x8dd   : > { %v1696_v9 = vmul.f32 %v1695_v6, %v1681_v7  ;;  %v1685_v12 = vpop.f32.mrb[19].mxu0 }
 0x8df   : > { %2953 = vtanh.f32 %v1696_v9  ;;  %v2391_v9 = vld [vmem:[%s3784_s7 + $0x6] sm:$0x3] }
 0x8e0   : > { %v1952_v12 = vrot.slane %v2391_v9, %v3563_v15 }
 0x8e9   : > { %v2954_v13 = vpop.eup %2953 }
 0x8ea   : > { %v1699_v14 = vmul.f32 %v2954_v13, %v1692_v45  ;;  %v2920_v45 = vld [vmem:[#allocation12 + $0x1d0] ss:$8 sps:$4 sm:$0xff]  }
 0x8ec   : > { %1704 = vadd.xlane.f32.xlu0 %v1699_v14  ;;  %v1700_v17 = vmul.f32 1.442695, %v1699_v14 }
 0x8ee   : > { %2955 = vpow2.f32 %v1700_v17 }
 0x8ef   : > { %2957 = vpow2.f32 %v2082_v26 }
 0x8f8   : > { %v2956_v21 = vpop.eup %2955 }
 0x8f9   : > { %v1702_v23 = vmul.f32 %v2956_v21, %v3642_v10  ;;  %v2901_v10 = vld [vmem:[#allocation11 + $0xe0] sm:$0xff]   ;;  %v2958_v62 = vpop.eup %2957 }
 0x8fa   : > { %2632 = vmatpush3.bf16.msra.mxu0 %v2901_v10  ;;  %2663 = vpush %v2958_v62 }
 0x8fb   : > { %v1703_v24 = vadd.f32 %v1702_v23, %v1683_v22  ;;  %2633 = vmatprep.subr.bf16.mxu0 %v3217_v1 }
 0x8fd   : > { %v2103_v25 = vmul.f32 %v1703_v24, %v1703_v24  ;;  %v1706_v27 = vpack.c.bf16 %v1703_v24, %v1703_v24  ;;  %v1956_v24 = vrot.slane %v2391_v9, %v3566_v16 }
 0x8fe   : > { %2634 = vmatpush3.bf16.msra.mxu0 %v2902_v33 }
 0x8ff   : > { %2104 = vadd.xlane.f32.xlu0 %v2103_v25  ;;  %2620 = vmatmul.mubr.bf16.vlgmr.msra.gmra.mrb[16].mxu1 %v1706_v27 }
 0x900   : > { %2071 = vmatprep.mubr.bf16.mxu1 %v3219_v58  ;;  %2635 = vmatprep.subr.bf16.mxu0 %v3217_v1  ;;  %v2903_v58 = vld [vmem:[#allocation11 + $0xf0] sm:$0xff]  }
 0x901   : > { %2040 = vmatpush1.bf16.msra.mxu1 %v2905_v35 }
 0x902   : > { %2636 = vmatpush3.bf16.msra.mxu0 %v2903_v58  ;;  %2041 = vmatprep.subr.bf16.mxu1 %v2910_v38 }
 0x903   : > { %2637 = vmatprep.subr.bf16.mxu0 %v3217_v1  ;;  %v2917_v1 = vld [vmem:[#allocation12 + $0x1c0] ss:$8 sps:$4 sm:$0xff]  }
 0x905   : > { %2042 = vmatpush1.bf16.msra.mxu1 %v2908_v39 }
 0x906   : > { %2638 = vmatpush3.bf16.msra.mxu0 %v2904_v34  ;;  %2043 = vmatprep.subr.bf16.mxu1 %v2913_v40 }
 0x909   : > { %2044 = vmatpush1.bf16.msra.mxu1 %v2911_v41 }
 0x90a   : > { %2045 = vmatprep.subr.bf16.mxu1 %v2916_v42 }
 0x90d   : > { %2046 = vmatpush1.bf16.msra.mxu1 %v2914_v43 }
 0x90e   : > { %2047 = vmatprep.subr.bf16.mxu1 %v2919_v47 }
 0x911   : > { %2048 = vmatpush1.bf16.msra.mxu1 %v2917_v1 }
 0x912   : > { %2049 = vmatprep.subr.bf16.mxu1 %v2922_v44 }
 0x915   : > { %2050 = vmatpush1.bf16.msra.mxu1 %v2920_v45 }
 0x916   : > { %2051 = vmatprep.subr.bf16.mxu1 %v2925_v46 }
 0x919   : > { %2052 = vmatpush1.bf16.msra.mxu1 %v2923_v49 }
 0x91a   : > { %2053 = vmatprep.subr.bf16.mxu1 %v2928_v56 }
 0x91d   : > { %2054 = vmatpush1.bf16.msra.mxu1 %v2926_v63 }
 0x92b   : > { %s2664_s17 = spop %2663 }
 0x92c   : > { %v2085_v37 = vstv %s2664_s17 }
 0x92d   : > { %2959 = vrcp.f32 %v2085_v37 }
 0x937   : > { %v2960_v0 = vpop.eup %2959 }
 0x938   : > { %2665 = vpush %v2960_v0 }
 0x969   : > { %s2666_s26 = spop %2665 }
 0x96a   : > { %v2088_v14 = vstv %s2666_s26 }
 0x979   : > { %v1705_v30 = vpop.xlane.xlu0 %1704 }
 0x97a   : > { %v2101_v10 = vadd.f32 %v3709_v31, %v1705_v30 }
 0x98c   : > { %v2105_v33 = vpop.xlane.xlu0 %2104 }
 0x98d   : > { %v2106_v34 = vmul.f32 0.5, %v2105_v33 }
 0x9d2   : > { %v1810_v51 = vpop.f32.mrb[16].mxu1 }
 0x9d3   : > { %v1811_v52 = vadd.f32 %v1810_v51, %v1727_v50  ;;  %v2621_v53 = vpop.f32.mrb[17].mxu1 }
 0x9d4   : > { %v1813_v54 = vpop.f32.mrb[18].mxu1 }
 0x9d5   : > { %v1816_v55 = vmax.f32 %v1811_v52, 0.0  ;;  %v2622_v57 = vpop.f32.mrb[19].mxu1 }
 0x9d7   : > { %v1817_v60 = vpack.c.bf16 %v1816_v55, %v1816_v55 }
 0x9d9   : > { %2640 = vmatmul.mubr.bf16.vlgmr.msra.gmra.mrb[20].mxu0 %v1817_v60 }
 0xaac   : > { %v1921_v3 = vpop.f32.mrb[20].mxu0 }
 0xaad   : > { %v1922_v5 = vadd.f32 %v1921_v3, %v1838_v2  ;;  %v2641_v19 = vpop.f32.mrb[21].mxu0 }
 0xaae   : > { %v1924_v6 = vpop.f32.mrb[22].mxu0 }
 0xaaf   : > { %v1927_v7 = vmax.f32 %v1922_v5, 0.0  ;;  %v2642_v8 = vpop.f32.mrb[23].mxu0 }
 0xab1   : > { %v1928_v4 = vpack.c.bf16 %v1927_v7, %v1927_v7 }
 0xab3   : > { %2072 = vmatmul.mubr.bf16.vlgmr.msra.gmra.mrb[20].mxu1 %v1928_v4 }
 0xb86   : > { %v2073_v13 = vpop.f32.mrb[20].mxu1 }
 0xb87   : > { %v2074_v11 = vadd.f32 %v2073_v13, %v1952_v12  ;;  %v2075_v17 = vpop.f32.mrb[21].mxu1 }
 0xb88   : > { %v2077_v48 = vpop.f32.mrb[22].mxu1  ;;  %v2076_v15 = vadd.f32 %v2075_v17, %v1956_v24 }
 0xb89   : > { %v2089_v59 = vmul.f32 %v2088_v14, %v2074_v11  ;;  %v2078_v18 = vpop.f32.mrb[23].mxu1 }
 0xb8b   : > { %2961 = vtanh.f32 %v2089_v59 }
 0xb95   : > { %v2962_v21 = vpop.eup %2961 }
 0xb96   : > { %v2092_v22 = vmul.f32 %v2962_v21, %v2085_v37 }
 0xb98   : > { %2097 = vadd.xlane.f32.xlu1 %v2092_v22  ;;  %v2093_v23 = vmul.f32 1.442695, %v2092_v22 }
 0xb9a   : > { %2963 = vpow2.f32 %v2093_v23 }
 0xba4   : > { %v2964_v25 = vpop.eup %2963 }
 0xba5   : > { %v2095_v27 = vmul.f32 %v2964_v25, %v3694_v61 }
 0xba7   : > { %v2096_v28 = vadd.f32 %v2095_v27, %v2076_v15 }
 0xba9   : > { %v2108_v29 = vmul.f32 %v2096_v28, %v2096_v28 }
 0xbab   : > { %2109 = vadd.xlane.f32.xlu1 %v2108_v29 }
 0xc25   : > { %v2098_v32 = vpop.xlane.xlu1 %2097 }
 0xc26   : > { %v2102_v58 = vadd.f32 %v2101_v10, %v2098_v32 }
 0xc28   : > { %v2107_v36 = vsub.f32 %v2102_v58, %v2106_v34 }
 0xc38   : > { %v2110_v35 = vpop.xlane.xlu1 %2109 }
 0xc39   : > { %v2111_v16 = vmul.f32 0.5, %v2110_v35 }
 0xc3b   : > { %v2112_v38 = vsub.f32 %v2107_v36, %v2111_v16 }
 0xc3d   : > { %v2113_v61 = vadd.f32 -7.351508, %v2112_v38 }
 0xc3f   : > { %2115 = vst.msk [vmem:[%s427_s14] sm:$0xff] %vm2114_vm2, %v2113_v61 }
 0xc40 PF: > { %p24_p3 = scmp.ge.s32.totalorder %s3424_s15, 4   ;;  %s3815_s27 = smov %s3196_s28 }
 0xc41   : > { %s3816_s28 = smov %s3200_s29  ;;  %s3817_s29 = smov %s3435_s16 }
 0xc42   : > { %s3818_s30 = smov %s3424_s15  ;;  %26 = sbr.rel (!%p24_p3) target bundleno = 11 (0xb), region = 139 }
 0xc49   :  { %2135 = vsyncpa [#allocation3], 1 }
 0xc4a   :  { %2137 = vsyncpa [#allocation3 + $0x1], 1 }
 0xc4b   :  { %2138 = vsyncpa [#allocation7], 1 }
 0xc4c   :  { %2140 = vsyncpa [#allocation7 + $0x1], 1 }
 0xc4d   :  { %2141 = vsyncpa [#allocation10], 1 }
 0xc4e   :  { %2142 = vsyncpa [#allocation13], 1 }
 0xc4f   :  { %2143 = vsyncpa [#allocation4], 1 }
 0xc50   :  { %2145 = vsyncpa [#allocation4 + $0x1], 1 }

</bundles_post_ra>
